<compile_context>
chip_gen: v5e
topology: v5e:2x2
jax: 0.10.0
libtpu: 0.0.40
codegen_flags: <defaults>
</compile_context>

<pallas_src>
import functools

import jax
import jax.numpy as jnp
from jax import lax
from jax.experimental import pallas as pl
from jax.experimental.pallas import tpu as pltpu


# ----------------------------------------------------------------------------
# Fused kernel: conv3x3 -> ReLU -> conv3x3 -> ReLU -> conv3x3 (+ 1x1 skip) -> ReLU
# ----------------------------------------------------------------------------
def _block_kernel(x_ref, w1_ref, b1_ref, w2_ref, b2_ref, w3_ref, b3_ref,
                  ws_ref, o_ref, xpad_ref, *, H, W, PAD):
    """One batch element per grid step.

    x_ref   : (1, Cin,  HW)       block input (lane-dense, HW = H*W)
    w*_ref  : (9, Cout, Cin*)     per-tap weights, tap index t = ky*3 + kx
    b*_ref  : (Cout, 1)           biases
    ws_ref  : (Cout, Cin)         1x1 skip weight (no bias)
    o_ref   : (1, Cout, HW)       output
    xpad_ref: (Cmax, PAD+HW+PAD)  f32 VMEM halo scratch (pads stay zero)
    """
    HW = H * W

    # Column-boundary masks (row boundaries are handled by the zero padding in
    # the halo scratch).  Computed once, shared by all three convs.
    col = lax.broadcasted_iota(jnp.int32, (1, HW), 1) % W
    not_left = col != 0           # tap dx == -1: don't read previous row's last col
    not_right = col != (W - 1)    # tap dx == +1: don't read next row's first col

    # Zero the halo scratch once per grid step (interior is overwritten before
    # every conv; pads are never written so they stay zero).
    xpad_ref[...] = jnp.zeros(xpad_ref.shape, xpad_ref.dtype)

    def conv3x3(x, w_ref, b_ref):
        # x: (C, HW) f32  ->  (Cout, HW) f32
        C = x.shape[0]
        cout = w_ref.shape[1]
        xpad_ref[0:C, pl.ds(PAD, HW)] = x
        # Bias folded into the accumulator init (saves a full-tile VPU add).
        acc = jnp.broadcast_to(b_ref[...], (cout, HW)).astype(jnp.float32)
        t = 0
        for dy in (-1, 0, 1):
            for dx in (-1, 0, 1):
                shift = dy * W + dx
                # Lane-offset load of the shifted activation: xs[:, p] = x[:, p+shift]
                xs = xpad_ref[0:C, pl.ds(PAD + shift, HW)]
                if dx == -1:
                    xs = jnp.where(not_left, xs, 0.0)
                elif dx == 1:
                    xs = jnp.where(not_right, xs, 0.0)
                # Weight-stationary, lane-dense MXU matmul: (Cout, C) @ (C, HW)
                acc = acc + jnp.dot(w_ref[t], xs,
                                    preferred_element_type=jnp.float32)
                t += 1
        return acc

    x = x_ref[0].astype(jnp.float32)                       # (Cin, HW)
    h = jnp.maximum(conv3x3(x, w1_ref, b1_ref), 0.0)       # conv1 + ReLU
    h = jnp.maximum(conv3x3(h, w2_ref, b2_ref), 0.0)       # conv2 + ReLU
    y = conv3x3(h, w3_ref, b3_ref)                         # conv3
    y = y + jnp.dot(ws_ref[...], x,
                    preferred_element_type=jnp.float32)    # 1x1 skip (no bias)
    o_ref[0] = jnp.maximum(y, 0.0).astype(o_ref.dtype)     # fused residual ReLU


# ----------------------------------------------------------------------------
# Wrapper
# ----------------------------------------------------------------------------
def _prep_w3x3(w):
    """(3, 3, Cin, Cout) HWIO -> (9, Cout, Cin), tap index = ky*3 + kx."""
    kh, kw, ci, co = w.shape
    return jnp.transpose(w.reshape(kh * kw, ci, co), (0, 2, 1))


def block_forward(x_nchw, params):
    """Full Block forward.  x_nchw: (N, Cin, H, W) like the PyTorch module."""
    N, Cin, H, W = x_nchw.shape
    HW = H * W                                   # 256 for 16x16 -> lane-dense
    Cout = params["w1"].shape[-1]
    Cmax = max(Cin, Cout)
    PAD = 128                                    # halo pad, keeps interior 128-aligned

    # NCHW already gives the (C, H*W) channels-on-sublanes layout for free.
    x = x_nchw.reshape(N, Cin, HW)

    w1 = _prep_w3x3(params["w1"])
    w2 = _prep_w3x3(params["w2"])
    w3 = _prep_w3x3(params["w3"])
    b1 = params["b1"].reshape(Cout, 1)
    b2 = params["b2"].reshape(Cout, 1)
    b3 = params["b3"].reshape(Cout, 1)
    ws = params["ws"].T                          # (Cout, Cin)

    kernel = functools.partial(_block_kernel, H=H, W=W, PAD=PAD)
    y = pl.pallas_call(
        kernel,
        out_shape=jax.ShapeDtypeStruct((N, Cout, HW), x_nchw.dtype),
        grid=(N,),
        in_specs=[
            pl.BlockSpec((1, Cin, HW), lambda n: (n, 0, 0)),
            pl.BlockSpec((9, Cout, Cin), lambda n: (0, 0, 0)),
            pl.BlockSpec((Cout, 1), lambda n: (0, 0)),
            pl.BlockSpec((9, Cout, Cout), lambda n: (0, 0, 0)),
            pl.BlockSpec((Cout, 1), lambda n: (0, 0)),
            pl.BlockSpec((9, Cout, Cout), lambda n: (0, 0, 0)),
            pl.BlockSpec((Cout, 1), lambda n: (0, 0)),
            pl.BlockSpec((Cout, Cin), lambda n: (0, 0)),
        ],
        out_specs=pl.BlockSpec((1, Cout, HW), lambda n: (n, 0, 0)),
        scratch_shapes=[pltpu.VMEM((Cmax, PAD + HW + PAD), jnp.float32)],
        compiler_params=pltpu.CompilerParams(
            dimension_semantics=("parallel",)),   # N=2 -> both TCs busy on v7x
    )(x, w1, b1, w2, b2, w3, b3, ws)
    return y.reshape(N, Cout, H, W)


# ----------------------------------------------------------------------------
# Pure-JAX reference (for correctness check only)
# ----------------------------------------------------------------------------
def _conv_ref(x, w, b=None):
    dn = ("NHWC", "HWIO", "NHWC")
    y = lax.conv_general_dilated(x, w, (1, 1), "SAME", dimension_numbers=dn)
    return y if b is None else y + b


def block_ref(x_nchw, p):
    x = jnp.transpose(x_nchw, (0, 2, 3, 1))
    h = jax.nn.relu(_conv_ref(x, p["w1"], p["b1"]))
    h = jax.nn.relu(_conv_ref(h, p["w2"], p["b2"]))
    h = _conv_ref(h, p["w3"], p["b3"])
    skip = _conv_ref(x, p["ws"].reshape(1, 1, *p["ws"].shape))
    y = jax.nn.relu(h + skip)
    return jnp.transpose(y, (0, 3, 1, 2))


# ----------------------------------------------------------------------------
# Main
# ----------------------------------------------------------------------------
if __name__ == "__main__":
    N, Cin, H, W = 2, 4, 16, 16   # input shape (NCHW), n_in=4
    Cout = 8                       # n_out=8  (n_in != n_out -> 1x1 skip conv)

    key = jax.random.PRNGKey(0)
    kx, k1, k2, k3, k4, k5, k6, k7 = jax.random.split(key, 8)

    x = jax.random.normal(kx, (N, Cin, H, W), jnp.float32)

    params = {
        "w1": 0.1 * jax.random.normal(k1, (3, 3, Cin, Cout), jnp.float32),
        "b1": 0.05 * jax.random.normal(k2, (Cout,), jnp.float32),
        "w2": 0.1 * jax.random.normal(k3, (3, 3, Cout, Cout), jnp.float32),
        "b2": 0.05 * jax.random.normal(k4, (Cout,), jnp.float32),
        "w3": 0.1 * jax.random.normal(k5, (3, 3, Cout, Cout), jnp.float32),
        "b3": 0.05 * jax.random.normal(k6, (Cout,), jnp.float32),
        "ws": 0.1 * jax.random.normal(k7, (Cin, Cout), jnp.float32),  # 1x1, no bias
    }

    out = jax.block_until_ready(block_forward(x, params))
    ref = jax.block_until_ready(block_ref(x, params))

    assert out.shape == (N, Cout, H, W), out.shape
    assert jnp.allclose(out, ref, atol=1e-4, rtol=1e-4), float(
        jnp.max(jnp.abs(out - ref)))

    print("KERNEL_OK")
</pallas_src>

<mosaic_0001>
module attributes {stable_mosaic.version = 11 : i64} {
  func.func @_block_kernel(%arg0: i32, %arg1: memref<1x4x256xf32, #tpu.memory_space<vmem>>, %arg2: memref<9x8x4xf32, #tpu.memory_space<vmem>>, %arg3: memref<8x1xf32, #tpu.memory_space<vmem>>, %arg4: memref<9x8x8xf32, #tpu.memory_space<vmem>>, %arg5: memref<8x1xf32, #tpu.memory_space<vmem>>, %arg6: memref<9x8x8xf32, #tpu.memory_space<vmem>>, %arg7: memref<8x1xf32, #tpu.memory_space<vmem>>, %arg8: memref<8x4xf32, #tpu.memory_space<vmem>>, %arg9: memref<1x8x256xf32, #tpu.memory_space<vmem>>, %arg10: memref<8x512xf32, #tpu.memory_space<vmem>>) attributes {dimension_semantics = [#tpu.dimension_semantics<parallel>], iteration_bounds = array<i64: 2>, scalar_prefetch = 0 : i64, scratch_operands = 1 : i64, tpu.core_type = #tpu.core_type<tc>, window_params = [{transform_indices = @transform_0, window_bounds = array<i64: 1, 4, 256>}, {pipeline_mode = #tpu.pipeline_mode<synchronous>, transform_indices = @transform_1, window_bounds = array<i64: 9, 8, 4>}, {pipeline_mode = #tpu.pipeline_mode<synchronous>, transform_indices = @transform_2, window_bounds = array<i64: 8, 1>}, {pipeline_mode = #tpu.pipeline_mode<synchronous>, transform_indices = @transform_3, window_bounds = array<i64: 9, 8, 8>}, {pipeline_mode = #tpu.pipeline_mode<synchronous>, transform_indices = @transform_4, window_bounds = array<i64: 8, 1>}, {pipeline_mode = #tpu.pipeline_mode<synchronous>, transform_indices = @transform_5, window_bounds = array<i64: 9, 8, 8>}, {pipeline_mode = #tpu.pipeline_mode<synchronous>, transform_indices = @transform_6, window_bounds = array<i64: 8, 1>}, {pipeline_mode = #tpu.pipeline_mode<synchronous>, transform_indices = @transform_7, window_bounds = array<i64: 8, 4>}, {transform_indices = @transform_8, window_bounds = array<i64: 1, 8, 256>}]} {
    %0 = tpu.iota {dimensions = array<i32: 1>} : vector<1x256xi32>
    %c16_i32 = arith.constant 16 : i32
    %c0_i32 = arith.constant 0 : i32
    %1 = arith.cmpi eq, %c16_i32, %c0_i32 : i32
    %c1_i32 = arith.constant 1 : i32
    %2 = arith.select %1, %c1_i32, %c16_i32 : i32
    %3 = vector.broadcast %2 : i32 to vector<1x256xi32>
    %4 = arith.remsi %0, %3 : vector<1x256xi32>
    %c0_i32_0 = arith.constant 0 : i32
    %5 = vector.broadcast %c0_i32_0 : i32 to vector<1x256xi32>
    %6 = arith.cmpi ne, %4, %5 : vector<1x256xi32>
    %c0_i32_1 = arith.constant 0 : i32
    %7 = vector.broadcast %c0_i32_1 : i32 to vector<1x256xi32>
    %8 = arith.cmpi slt, %4, %7 : vector<1x256xi32>
    %c0_i32_2 = arith.constant 0 : i32
    %9 = arith.cmpi slt, %2, %c0_i32_2 : i32
    %10 = vector.broadcast %9 : i1 to vector<1x256xi1>
    %11 = vector.broadcast %10 : vector<1x256xi1> to vector<1x256xi1>
    %12 = arith.xori %8, %11 : vector<1x256xi1>
    %13 = arith.andi %12, %6 : vector<1x256xi1>
    %14 = vector.broadcast %2 : i32 to vector<1x256xi32>
    %15 = arith.addi %4, %14 : vector<1x256xi32>
    %16 = arith.select %13, %15, %4 : vector<1x256xi1>, vector<1x256xi32>
    %c0_i32_3 = arith.constant 0 : i32
    %17 = vector.broadcast %c0_i32_3 : i32 to vector<1x256xi32>
    %18 = arith.cmpi ne, %16, %17 : vector<1x256xi32>
    %c15_i32 = arith.constant 15 : i32
    %19 = vector.broadcast %c15_i32 : i32 to vector<1x256xi32>
    %20 = arith.cmpi ne, %16, %19 : vector<1x256xi32>
    %cst = arith.constant 0.000000e+00 : f32
    %21 = vector.broadcast %cst : f32 to vector<8x512xf32>
    %c0 = arith.constant 0 : index
    %c0_4 = arith.constant 0 : index
    %22 = vector.load %arg10[%c0, %c0_4] : memref<8x512xf32, #tpu.memory_space<vmem>>, vector<8x512xf32>
    tpu.vector_store %arg10[%c0, %c0_4], %21 {strides = array<i32>} : memref<8x512xf32, #tpu.memory_space<vmem>>, vector<8x512xf32>,
    %c0_5 = arith.constant 0 : index
    %c0_6 = arith.constant 0 : index
    %c0_7 = arith.constant 0 : index
    %23 = vector.load %arg1[%c0_5, %c0_6, %c0_7] : memref<1x4x256xf32, #tpu.memory_space<vmem>>, vector<1x4x256xf32>
    %24 = vector.shape_cast %23 : vector<1x4x256xf32> to vector<4x256xf32>
    %c0_8 = arith.constant 0 : index
    %c128 = arith.constant 128 : index
    %25 = vector.load %arg10[%c0_8, %c128] : memref<8x512xf32, #tpu.memory_space<vmem>>, vector<4x256xf32>
    tpu.vector_store %arg10[%c0_8, %c128], %24 {strides = array<i32>} : memref<8x512xf32, #tpu.memory_space<vmem>>, vector<4x256xf32>,
    %c0_9 = arith.constant 0 : index
    %c0_10 = arith.constant 0 : index
    %26 = vector.load %arg3[%c0_9, %c0_10] : memref<8x1xf32, #tpu.memory_space<vmem>>, vector<8x1xf32>
    %27 = vector.shape_cast %26 : vector<8x1xf32> to vector<8x1xf32>
    %28 = vector.broadcast %27 : vector<8x1xf32> to vector<8x256xf32>
    %c0_11 = arith.constant 0 : index
    %c111 = arith.constant 111 : index
    %29 = vector.load %arg10[%c0_11, %c111] : memref<8x512xf32, #tpu.memory_space<vmem>>, vector<4x256xf32>
    %cst_12 = arith.constant 0.000000e+00 : f32
    %30 = vector.shape_cast %18 : vector<1x256xi1> to vector<1x256xi1>
    %31 = vector.broadcast %30 : vector<1x256xi1> to vector<4x256xi1>
    %32 = vector.broadcast %cst_12 : f32 to vector<4x256xf32>
    %33 = arith.select %31, %29, %32 : vector<4x256xi1>, vector<4x256xf32>
    %c0_13 = arith.constant 0 : index
    %c0_14 = arith.constant 0 : index
    %c0_15 = arith.constant 0 : index
    %34 = vector.load %arg2[%c0_13, %c0_14, %c0_15] : memref<9x8x4xf32, #tpu.memory_space<vmem>>, vector<1x8x4xf32>
    %35 = vector.shape_cast %34 : vector<1x8x4xf32> to vector<8x4xf32>
    %cst_16 = arith.constant dense<0.000000e+00> : vector<8x256xf32>
    %36 = tpu.matmul %35, %33, %cst_16 {dimension_numbers = #tpu.dot_dimension_numbers<[1], [0], [0], [1], [0, 0, 1, 1], [], []>} : vector<8x4xf32>, vector<4x256xf32>, vector<8x256xf32> -> vector<8x256xf32>
    %37 = arith.addf %28, %36 : vector<8x256xf32>
    %c0_17 = arith.constant 0 : index
    %c112 = arith.constant 112 : index
    %38 = vector.load %arg10[%c0_17, %c112] : memref<8x512xf32, #tpu.memory_space<vmem>>, vector<4x256xf32>
    %c1 = arith.constant 1 : index
    %c0_18 = arith.constant 0 : index
    %c0_19 = arith.constant 0 : index
    %39 = vector.load %arg2[%c1, %c0_18, %c0_19] : memref<9x8x4xf32, #tpu.memory_space<vmem>>, vector<1x8x4xf32>
    %40 = vector.shape_cast %39 : vector<1x8x4xf32> to vector<8x4xf32>
    %cst_20 = arith.constant dense<0.000000e+00> : vector<8x256xf32>
    %41 = tpu.matmul %40, %38, %cst_20 {dimension_numbers = #tpu.dot_dimension_numbers<[1], [0], [0], [1], [0, 0, 1, 1], [], []>} : vector<8x4xf32>, vector<4x256xf32>, vector<8x256xf32> -> vector<8x256xf32>
    %42 = arith.addf %37, %41 : vector<8x256xf32>
    %c0_21 = arith.constant 0 : index
    %c113 = arith.constant 113 : index
    %43 = vector.load %arg10[%c0_21, %c113] : memref<8x512xf32, #tpu.memory_space<vmem>>, vector<4x256xf32>
    %cst_22 = arith.constant 0.000000e+00 : f32
    %44 = vector.shape_cast %20 : vector<1x256xi1> to vector<1x256xi1>
    %45 = vector.broadcast %44 : vector<1x256xi1> to vector<4x256xi1>
    %46 = vector.broadcast %cst_22 : f32 to vector<4x256xf32>
    %47 = arith.select %45, %43, %46 : vector<4x256xi1>, vector<4x256xf32>
    %c2 = arith.constant 2 : index
    %c0_23 = arith.constant 0 : index
    %c0_24 = arith.constant 0 : index
    %48 = vector.load %arg2[%c2, %c0_23, %c0_24] : memref<9x8x4xf32, #tpu.memory_space<vmem>>, vector<1x8x4xf32>
    %49 = vector.shape_cast %48 : vector<1x8x4xf32> to vector<8x4xf32>
    %cst_25 = arith.constant dense<0.000000e+00> : vector<8x256xf32>
    %50 = tpu.matmul %49, %47, %cst_25 {dimension_numbers = #tpu.dot_dimension_numbers<[1], [0], [0], [1], [0, 0, 1, 1], [], []>} : vector<8x4xf32>, vector<4x256xf32>, vector<8x256xf32> -> vector<8x256xf32>
    %51 = arith.addf %42, %50 : vector<8x256xf32>
    %c0_26 = arith.constant 0 : index
    %c127 = arith.constant 127 : index
    %52 = vector.load %arg10[%c0_26, %c127] : memref<8x512xf32, #tpu.memory_space<vmem>>, vector<4x256xf32>
    %cst_27 = arith.constant 0.000000e+00 : f32
    %53 = vector.shape_cast %18 : vector<1x256xi1> to vector<1x256xi1>
    %54 = vector.broadcast %53 : vector<1x256xi1> to vector<4x256xi1>
    %55 = vector.broadcast %cst_27 : f32 to vector<4x256xf32>
    %56 = arith.select %54, %52, %55 : vector<4x256xi1>, vector<4x256xf32>
    %c3 = arith.constant 3 : index
    %c0_28 = arith.constant 0 : index
    %c0_29 = arith.constant 0 : index
    %57 = vector.load %arg2[%c3, %c0_28, %c0_29] : memref<9x8x4xf32, #tpu.memory_space<vmem>>, vector<1x8x4xf32>
    %58 = vector.shape_cast %57 : vector<1x8x4xf32> to vector<8x4xf32>
    %cst_30 = arith.constant dense<0.000000e+00> : vector<8x256xf32>
    %59 = tpu.matmul %58, %56, %cst_30 {dimension_numbers = #tpu.dot_dimension_numbers<[1], [0], [0], [1], [0, 0, 1, 1], [], []>} : vector<8x4xf32>, vector<4x256xf32>, vector<8x256xf32> -> vector<8x256xf32>
    %60 = arith.addf %51, %59 : vector<8x256xf32>
    %c0_31 = arith.constant 0 : index
    %c128_32 = arith.constant 128 : index
    %61 = vector.load %arg10[%c0_31, %c128_32] : memref<8x512xf32, #tpu.memory_space<vmem>>, vector<4x256xf32>
    %c4 = arith.constant 4 : index
    %c0_33 = arith.constant 0 : index
    %c0_34 = arith.constant 0 : index
    %62 = vector.load %arg2[%c4, %c0_33, %c0_34] : memref<9x8x4xf32, #tpu.memory_space<vmem>>, vector<1x8x4xf32>
    %63 = vector.shape_cast %62 : vector<1x8x4xf32> to vector<8x4xf32>
    %cst_35 = arith.constant dense<0.000000e+00> : vector<8x256xf32>
    %64 = tpu.matmul %63, %61, %cst_35 {dimension_numbers = #tpu.dot_dimension_numbers<[1], [0], [0], [1], [0, 0, 1, 1], [], []>} : vector<8x4xf32>, vector<4x256xf32>, vector<8x256xf32> -> vector<8x256xf32>
    %65 = arith.addf %60, %64 : vector<8x256xf32>
    %c0_36 = arith.constant 0 : index
    %c129 = arith.constant 129 : index
    %66 = vector.load %arg10[%c0_36, %c129] : memref<8x512xf32, #tpu.memory_space<vmem>>, vector<4x256xf32>
    %cst_37 = arith.constant 0.000000e+00 : f32
    %67 = vector.shape_cast %20 : vector<1x256xi1> to vector<1x256xi1>
    %68 = vector.broadcast %67 : vector<1x256xi1> to vector<4x256xi1>
    %69 = vector.broadcast %cst_37 : f32 to vector<4x256xf32>
    %70 = arith.select %68, %66, %69 : vector<4x256xi1>, vector<4x256xf32>
    %c5 = arith.constant 5 : index
    %c0_38 = arith.constant 0 : index
    %c0_39 = arith.constant 0 : index
    %71 = vector.load %arg2[%c5, %c0_38, %c0_39] : memref<9x8x4xf32, #tpu.memory_space<vmem>>, vector<1x8x4xf32>
    %72 = vector.shape_cast %71 : vector<1x8x4xf32> to vector<8x4xf32>
    %cst_40 = arith.constant dense<0.000000e+00> : vector<8x256xf32>
    %73 = tpu.matmul %72, %70, %cst_40 {dimension_numbers = #tpu.dot_dimension_numbers<[1], [0], [0], [1], [0, 0, 1, 1], [], []>} : vector<8x4xf32>, vector<4x256xf32>, vector<8x256xf32> -> vector<8x256xf32>
    %74 = arith.addf %65, %73 : vector<8x256xf32>
    %c0_41 = arith.constant 0 : index
    %c143 = arith.constant 143 : index
    %75 = vector.load %arg10[%c0_41, %c143] : memref<8x512xf32, #tpu.memory_space<vmem>>, vector<4x256xf32>
    %cst_42 = arith.constant 0.000000e+00 : f32
    %76 = vector.shape_cast %18 : vector<1x256xi1> to vector<1x256xi1>
    %77 = vector.broadcast %76 : vector<1x256xi1> to vector<4x256xi1>
    %78 = vector.broadcast %cst_42 : f32 to vector<4x256xf32>
    %79 = arith.select %77, %75, %78 : vector<4x256xi1>, vector<4x256xf32>
    %c6 = arith.constant 6 : index
    %c0_43 = arith.constant 0 : index
    %c0_44 = arith.constant 0 : index
    %80 = vector.load %arg2[%c6, %c0_43, %c0_44] : memref<9x8x4xf32, #tpu.memory_space<vmem>>, vector<1x8x4xf32>
    %81 = vector.shape_cast %80 : vector<1x8x4xf32> to vector<8x4xf32>
    %cst_45 = arith.constant dense<0.000000e+00> : vector<8x256xf32>
    %82 = tpu.matmul %81, %79, %cst_45 {dimension_numbers = #tpu.dot_dimension_numbers<[1], [0], [0], [1], [0, 0, 1, 1], [], []>} : vector<8x4xf32>, vector<4x256xf32>, vector<8x256xf32> -> vector<8x256xf32>
    %83 = arith.addf %74, %82 : vector<8x256xf32>
    %c0_46 = arith.constant 0 : index
    %c144 = arith.constant 144 : index
    %84 = vector.load %arg10[%c0_46, %c144] : memref<8x512xf32, #tpu.memory_space<vmem>>, vector<4x256xf32>
    %c7 = arith.constant 7 : index
    %c0_47 = arith.constant 0 : index
    %c0_48 = arith.constant 0 : index
    %85 = vector.load %arg2[%c7, %c0_47, %c0_48] : memref<9x8x4xf32, #tpu.memory_space<vmem>>, vector<1x8x4xf32>
    %86 = vector.shape_cast %85 : vector<1x8x4xf32> to vector<8x4xf32>
    %cst_49 = arith.constant dense<0.000000e+00> : vector<8x256xf32>
    %87 = tpu.matmul %86, %84, %cst_49 {dimension_numbers = #tpu.dot_dimension_numbers<[1], [0], [0], [1], [0, 0, 1, 1], [], []>} : vector<8x4xf32>, vector<4x256xf32>, vector<8x256xf32> -> vector<8x256xf32>
    %88 = arith.addf %83, %87 : vector<8x256xf32>
    %c0_50 = arith.constant 0 : index
    %c145 = arith.constant 145 : index
    %89 = vector.load %arg10[%c0_50, %c145] : memref<8x512xf32, #tpu.memory_space<vmem>>, vector<4x256xf32>
    %cst_51 = arith.constant 0.000000e+00 : f32
    %90 = vector.shape_cast %20 : vector<1x256xi1> to vector<1x256xi1>
    %91 = vector.broadcast %90 : vector<1x256xi1> to vector<4x256xi1>
    %92 = vector.broadcast %cst_51 : f32 to vector<4x256xf32>
    %93 = arith.select %91, %89, %92 : vector<4x256xi1>, vector<4x256xf32>
    %c8 = arith.constant 8 : index
    %c0_52 = arith.constant 0 : index
    %c0_53 = arith.constant 0 : index
    %94 = vector.load %arg2[%c8, %c0_52, %c0_53] : memref<9x8x4xf32, #tpu.memory_space<vmem>>, vector<1x8x4xf32>
    %95 = vector.shape_cast %94 : vector<1x8x4xf32> to vector<8x4xf32>
    %cst_54 = arith.constant dense<0.000000e+00> : vector<8x256xf32>
    %96 = tpu.matmul %95, %93, %cst_54 {dimension_numbers = #tpu.dot_dimension_numbers<[1], [0], [0], [1], [0, 0, 1, 1], [], []>} : vector<8x4xf32>, vector<4x256xf32>, vector<8x256xf32> -> vector<8x256xf32>
    %97 = arith.addf %88, %96 : vector<8x256xf32>
    %cst_55 = arith.constant 0.000000e+00 : f32
    %98 = vector.broadcast %cst_55 : f32 to vector<8x256xf32>
    %99 = arith.maximumf %97, %98 : vector<8x256xf32>
    %c0_56 = arith.constant 0 : index
    %c128_57 = arith.constant 128 : index
    %100 = vector.load %arg10[%c0_56, %c128_57] : memref<8x512xf32, #tpu.memory_space<vmem>>, vector<8x256xf32>
    tpu.vector_store %arg10[%c0_56, %c128_57], %99 {strides = array<i32>} : memref<8x512xf32, #tpu.memory_space<vmem>>, vector<8x256xf32>,
    %c0_58 = arith.constant 0 : index
    %c0_59 = arith.constant 0 : index
    %101 = vector.load %arg5[%c0_58, %c0_59] : memref<8x1xf32, #tpu.memory_space<vmem>>, vector<8x1xf32>
    %102 = vector.shape_cast %101 : vector<8x1xf32> to vector<8x1xf32>
    %103 = vector.broadcast %102 : vector<8x1xf32> to vector<8x256xf32>
    %c0_60 = arith.constant 0 : index
    %c111_61 = arith.constant 111 : index
    %104 = vector.load %arg10[%c0_60, %c111_61] : memref<8x512xf32, #tpu.memory_space<vmem>>, vector<8x256xf32>
    %cst_62 = arith.constant 0.000000e+00 : f32
    %105 = vector.shape_cast %18 : vector<1x256xi1> to vector<1x256xi1>
    %106 = vector.broadcast %105 : vector<1x256xi1> to vector<8x256xi1>
    %107 = vector.broadcast %cst_62 : f32 to vector<8x256xf32>
    %108 = arith.select %106, %104, %107 : vector<8x256xi1>, vector<8x256xf32>
    %c0_63 = arith.constant 0 : index
    %c0_64 = arith.constant 0 : index
    %c0_65 = arith.constant 0 : index
    %109 = vector.load %arg4[%c0_63, %c0_64, %c0_65] : memref<9x8x8xf32, #tpu.memory_space<vmem>>, vector<1x8x8xf32>
    %110 = vector.shape_cast %109 : vector<1x8x8xf32> to vector<8x8xf32>
    %cst_66 = arith.constant dense<0.000000e+00> : vector<8x256xf32>
    %111 = tpu.matmul %110, %108, %cst_66 {dimension_numbers = #tpu.dot_dimension_numbers<[1], [0], [0], [1], [0, 0, 1, 1], [], []>} : vector<8x8xf32>, vector<8x256xf32>, vector<8x256xf32> -> vector<8x256xf32>
    %112 = arith.addf %103, %111 : vector<8x256xf32>
    %c0_67 = arith.constant 0 : index
    %c112_68 = arith.constant 112 : index
    %113 = vector.load %arg10[%c0_67, %c112_68] : memref<8x512xf32, #tpu.memory_space<vmem>>, vector<8x256xf32>
    %c1_69 = arith.constant 1 : index
    %c0_70 = arith.constant 0 : index
    %c0_71 = arith.constant 0 : index
    %114 = vector.load %arg4[%c1_69, %c0_70, %c0_71] : memref<9x8x8xf32, #tpu.memory_space<vmem>>, vector<1x8x8xf32>
    %115 = vector.shape_cast %114 : vector<1x8x8xf32> to vector<8x8xf32>
    %cst_72 = arith.constant dense<0.000000e+00> : vector<8x256xf32>
    %116 = tpu.matmul %115, %113, %cst_72 {dimension_numbers = #tpu.dot_dimension_numbers<[1], [0], [0], [1], [0, 0, 1, 1], [], []>} : vector<8x8xf32>, vector<8x256xf32>, vector<8x256xf32> -> vector<8x256xf32>
    %117 = arith.addf %112, %116 : vector<8x256xf32>
    %c0_73 = arith.constant 0 : index
    %c113_74 = arith.constant 113 : index
    %118 = vector.load %arg10[%c0_73, %c113_74] : memref<8x512xf32, #tpu.memory_space<vmem>>, vector<8x256xf32>
    %cst_75 = arith.constant 0.000000e+00 : f32
    %119 = vector.shape_cast %20 : vector<1x256xi1> to vector<1x256xi1>
    %120 = vector.broadcast %119 : vector<1x256xi1> to vector<8x256xi1>
    %121 = vector.broadcast %cst_75 : f32 to vector<8x256xf32>
    %122 = arith.select %120, %118, %121 : vector<8x256xi1>, vector<8x256xf32>
    %c2_76 = arith.constant 2 : index
    %c0_77 = arith.constant 0 : index
    %c0_78 = arith.constant 0 : index
    %123 = vector.load %arg4[%c2_76, %c0_77, %c0_78] : memref<9x8x8xf32, #tpu.memory_space<vmem>>, vector<1x8x8xf32>
    %124 = vector.shape_cast %123 : vector<1x8x8xf32> to vector<8x8xf32>
    %cst_79 = arith.constant dense<0.000000e+00> : vector<8x256xf32>
    %125 = tpu.matmul %124, %122, %cst_79 {dimension_numbers = #tpu.dot_dimension_numbers<[1], [0], [0], [1], [0, 0, 1, 1], [], []>} : vector<8x8xf32>, vector<8x256xf32>, vector<8x256xf32> -> vector<8x256xf32>
    %126 = arith.addf %117, %125 : vector<8x256xf32>
    %c0_80 = arith.constant 0 : index
    %c127_81 = arith.constant 127 : index
    %127 = vector.load %arg10[%c0_80, %c127_81] : memref<8x512xf32, #tpu.memory_space<vmem>>, vector<8x256xf32>
    %cst_82 = arith.constant 0.000000e+00 : f32
    %128 = vector.shape_cast %18 : vector<1x256xi1> to vector<1x256xi1>
    %129 = vector.broadcast %128 : vector<1x256xi1> to vector<8x256xi1>
    %130 = vector.broadcast %cst_82 : f32 to vector<8x256xf32>
    %131 = arith.select %129, %127, %130 : vector<8x256xi1>, vector<8x256xf32>
    %c3_83 = arith.constant 3 : index
    %c0_84 = arith.constant 0 : index
    %c0_85 = arith.constant 0 : index
    %132 = vector.load %arg4[%c3_83, %c0_84, %c0_85] : memref<9x8x8xf32, #tpu.memory_space<vmem>>, vector<1x8x8xf32>
    %133 = vector.shape_cast %132 : vector<1x8x8xf32> to vector<8x8xf32>
    %cst_86 = arith.constant dense<0.000000e+00> : vector<8x256xf32>
    %134 = tpu.matmul %133, %131, %cst_86 {dimension_numbers = #tpu.dot_dimension_numbers<[1], [0], [0], [1], [0, 0, 1, 1], [], []>} : vector<8x8xf32>, vector<8x256xf32>, vector<8x256xf32> -> vector<8x256xf32>
    %135 = arith.addf %126, %134 : vector<8x256xf32>
    %c0_87 = arith.constant 0 : index
    %c128_88 = arith.constant 128 : index
    %136 = vector.load %arg10[%c0_87, %c128_88] : memref<8x512xf32, #tpu.memory_space<vmem>>, vector<8x256xf32>
    %c4_89 = arith.constant 4 : index
    %c0_90 = arith.constant 0 : index
    %c0_91 = arith.constant 0 : index
    %137 = vector.load %arg4[%c4_89, %c0_90, %c0_91] : memref<9x8x8xf32, #tpu.memory_space<vmem>>, vector<1x8x8xf32>
    %138 = vector.shape_cast %137 : vector<1x8x8xf32> to vector<8x8xf32>
    %cst_92 = arith.constant dense<0.000000e+00> : vector<8x256xf32>
    %139 = tpu.matmul %138, %136, %cst_92 {dimension_numbers = #tpu.dot_dimension_numbers<[1], [0], [0], [1], [0, 0, 1, 1], [], []>} : vector<8x8xf32>, vector<8x256xf32>, vector<8x256xf32> -> vector<8x256xf32>
    %140 = arith.addf %135, %139 : vector<8x256xf32>
    %c0_93 = arith.constant 0 : index
    %c129_94 = arith.constant 129 : index
    %141 = vector.load %arg10[%c0_93, %c129_94] : memref<8x512xf32, #tpu.memory_space<vmem>>, vector<8x256xf32>
    %cst_95 = arith.constant 0.000000e+00 : f32
    %142 = vector.shape_cast %20 : vector<1x256xi1> to vector<1x256xi1>
    %143 = vector.broadcast %142 : vector<1x256xi1> to vector<8x256xi1>
    %144 = vector.broadcast %cst_95 : f32 to vector<8x256xf32>
    %145 = arith.select %143, %141, %144 : vector<8x256xi1>, vector<8x256xf32>
    %c5_96 = arith.constant 5 : index
    %c0_97 = arith.constant 0 : index
    %c0_98 = arith.constant 0 : index
    %146 = vector.load %arg4[%c5_96, %c0_97, %c0_98] : memref<9x8x8xf32, #tpu.memory_space<vmem>>, vector<1x8x8xf32>
    %147 = vector.shape_cast %146 : vector<1x8x8xf32> to vector<8x8xf32>
    %cst_99 = arith.constant dense<0.000000e+00> : vector<8x256xf32>
    %148 = tpu.matmul %147, %145, %cst_99 {dimension_numbers = #tpu.dot_dimension_numbers<[1], [0], [0], [1], [0, 0, 1, 1], [], []>} : vector<8x8xf32>, vector<8x256xf32>, vector<8x256xf32> -> vector<8x256xf32>
    %149 = arith.addf %140, %148 : vector<8x256xf32>
    %c0_100 = arith.constant 0 : index
    %c143_101 = arith.constant 143 : index
    %150 = vector.load %arg10[%c0_100, %c143_101] : memref<8x512xf32, #tpu.memory_space<vmem>>, vector<8x256xf32>
    %cst_102 = arith.constant 0.000000e+00 : f32
    %151 = vector.shape_cast %18 : vector<1x256xi1> to vector<1x256xi1>
    %152 = vector.broadcast %151 : vector<1x256xi1> to vector<8x256xi1>
    %153 = vector.broadcast %cst_102 : f32 to vector<8x256xf32>
    %154 = arith.select %152, %150, %153 : vector<8x256xi1>, vector<8x256xf32>
    %c6_103 = arith.constant 6 : index
    %c0_104 = arith.constant 0 : index
    %c0_105 = arith.constant 0 : index
    %155 = vector.load %arg4[%c6_103, %c0_104, %c0_105] : memref<9x8x8xf32, #tpu.memory_space<vmem>>, vector<1x8x8xf32>
    %156 = vector.shape_cast %155 : vector<1x8x8xf32> to vector<8x8xf32>
    %cst_106 = arith.constant dense<0.000000e+00> : vector<8x256xf32>
    %157 = tpu.matmul %156, %154, %cst_106 {dimension_numbers = #tpu.dot_dimension_numbers<[1], [0], [0], [1], [0, 0, 1, 1], [], []>} : vector<8x8xf32>, vector<8x256xf32>, vector<8x256xf32> -> vector<8x256xf32>
    %158 = arith.addf %149, %157 : vector<8x256xf32>
    %c0_107 = arith.constant 0 : index
    %c144_108 = arith.constant 144 : index
    %159 = vector.load %arg10[%c0_107, %c144_108] : memref<8x512xf32, #tpu.memory_space<vmem>>, vector<8x256xf32>
    %c7_109 = arith.constant 7 : index
    %c0_110 = arith.constant 0 : index
    %c0_111 = arith.constant 0 : index
    %160 = vector.load %arg4[%c7_109, %c0_110, %c0_111] : memref<9x8x8xf32, #tpu.memory_space<vmem>>, vector<1x8x8xf32>
    %161 = vector.shape_cast %160 : vector<1x8x8xf32> to vector<8x8xf32>
    %cst_112 = arith.constant dense<0.000000e+00> : vector<8x256xf32>
    %162 = tpu.matmul %161, %159, %cst_112 {dimension_numbers = #tpu.dot_dimension_numbers<[1], [0], [0], [1], [0, 0, 1, 1], [], []>} : vector<8x8xf32>, vector<8x256xf32>, vector<8x256xf32> -> vector<8x256xf32>
    %163 = arith.addf %158, %162 : vector<8x256xf32>
    %c0_113 = arith.constant 0 : index
    %c145_114 = arith.constant 145 : index
    %164 = vector.load %arg10[%c0_113, %c145_114] : memref<8x512xf32, #tpu.memory_space<vmem>>, vector<8x256xf32>
    %cst_115 = arith.constant 0.000000e+00 : f32
    %165 = vector.shape_cast %20 : vector<1x256xi1> to vector<1x256xi1>
    %166 = vector.broadcast %165 : vector<1x256xi1> to vector<8x256xi1>
    %167 = vector.broadcast %cst_115 : f32 to vector<8x256xf32>
    %168 = arith.select %166, %164, %167 : vector<8x256xi1>, vector<8x256xf32>
    %c8_116 = arith.constant 8 : index
    %c0_117 = arith.constant 0 : index
    %c0_118 = arith.constant 0 : index
    %169 = vector.load %arg4[%c8_116, %c0_117, %c0_118] : memref<9x8x8xf32, #tpu.memory_space<vmem>>, vector<1x8x8xf32>
    %170 = vector.shape_cast %169 : vector<1x8x8xf32> to vector<8x8xf32>
    %cst_119 = arith.constant dense<0.000000e+00> : vector<8x256xf32>
    %171 = tpu.matmul %170, %168, %cst_119 {dimension_numbers = #tpu.dot_dimension_numbers<[1], [0], [0], [1], [0, 0, 1, 1], [], []>} : vector<8x8xf32>, vector<8x256xf32>, vector<8x256xf32> -> vector<8x256xf32>
    %172 = arith.addf %163, %171 : vector<8x256xf32>
    %cst_120 = arith.constant 0.000000e+00 : f32
    %173 = vector.broadcast %cst_120 : f32 to vector<8x256xf32>
    %174 = arith.maximumf %172, %173 : vector<8x256xf32>
    %c0_121 = arith.constant 0 : index
    %c128_122 = arith.constant 128 : index
    %175 = vector.load %arg10[%c0_121, %c128_122] : memref<8x512xf32, #tpu.memory_space<vmem>>, vector<8x256xf32>
    tpu.vector_store %arg10[%c0_121, %c128_122], %174 {strides = array<i32>} : memref<8x512xf32, #tpu.memory_space<vmem>>, vector<8x256xf32>,
    %c0_123 = arith.constant 0 : index
    %c0_124 = arith.constant 0 : index
    %176 = vector.load %arg7[%c0_123, %c0_124] : memref<8x1xf32, #tpu.memory_space<vmem>>, vector<8x1xf32>
    %177 = vector.shape_cast %176 : vector<8x1xf32> to vector<8x1xf32>
    %178 = vector.broadcast %177 : vector<8x1xf32> to vector<8x256xf32>
    %c0_125 = arith.constant 0 : index
    %c111_126 = arith.constant 111 : index
    %179 = vector.load %arg10[%c0_125, %c111_126] : memref<8x512xf32, #tpu.memory_space<vmem>>, vector<8x256xf32>
    %cst_127 = arith.constant 0.000000e+00 : f32
    %180 = vector.shape_cast %18 : vector<1x256xi1> to vector<1x256xi1>
    %181 = vector.broadcast %180 : vector<1x256xi1> to vector<8x256xi1>
    %182 = vector.broadcast %cst_127 : f32 to vector<8x256xf32>
    %183 = arith.select %181, %179, %182 : vector<8x256xi1>, vector<8x256xf32>
    %c0_128 = arith.constant 0 : index
    %c0_129 = arith.constant 0 : index
    %c0_130 = arith.constant 0 : index
    %184 = vector.load %arg6[%c0_128, %c0_129, %c0_130] : memref<9x8x8xf32, #tpu.memory_space<vmem>>, vector<1x8x8xf32>
    %185 = vector.shape_cast %184 : vector<1x8x8xf32> to vector<8x8xf32>
    %cst_131 = arith.constant dense<0.000000e+00> : vector<8x256xf32>
    %186 = tpu.matmul %185, %183, %cst_131 {dimension_numbers = #tpu.dot_dimension_numbers<[1], [0], [0], [1], [0, 0, 1, 1], [], []>} : vector<8x8xf32>, vector<8x256xf32>, vector<8x256xf32> -> vector<8x256xf32>
    %187 = arith.addf %178, %186 : vector<8x256xf32>
    %c0_132 = arith.constant 0 : index
    %c112_133 = arith.constant 112 : index
    %188 = vector.load %arg10[%c0_132, %c112_133] : memref<8x512xf32, #tpu.memory_space<vmem>>, vector<8x256xf32>
    %c1_134 = arith.constant 1 : index
    %c0_135 = arith.constant 0 : index
    %c0_136 = arith.constant 0 : index
    %189 = vector.load %arg6[%c1_134, %c0_135, %c0_136] : memref<9x8x8xf32, #tpu.memory_space<vmem>>, vector<1x8x8xf32>
    %190 = vector.shape_cast %189 : vector<1x8x8xf32> to vector<8x8xf32>
    %cst_137 = arith.constant dense<0.000000e+00> : vector<8x256xf32>
    %191 = tpu.matmul %190, %188, %cst_137 {dimension_numbers = #tpu.dot_dimension_numbers<[1], [0], [0], [1], [0, 0, 1, 1], [], []>} : vector<8x8xf32>, vector<8x256xf32>, vector<8x256xf32> -> vector<8x256xf32>
    %192 = arith.addf %187, %191 : vector<8x256xf32>
    %c0_138 = arith.constant 0 : index
    %c113_139 = arith.constant 113 : index
    %193 = vector.load %arg10[%c0_138, %c113_139] : memref<8x512xf32, #tpu.memory_space<vmem>>, vector<8x256xf32>
    %cst_140 = arith.constant 0.000000e+00 : f32
    %194 = vector.shape_cast %20 : vector<1x256xi1> to vector<1x256xi1>
    %195 = vector.broadcast %194 : vector<1x256xi1> to vector<8x256xi1>
    %196 = vector.broadcast %cst_140 : f32 to vector<8x256xf32>
    %197 = arith.select %195, %193, %196 : vector<8x256xi1>, vector<8x256xf32>
    %c2_141 = arith.constant 2 : index
    %c0_142 = arith.constant 0 : index
    %c0_143 = arith.constant 0 : index
    %198 = vector.load %arg6[%c2_141, %c0_142, %c0_143] : memref<9x8x8xf32, #tpu.memory_space<vmem>>, vector<1x8x8xf32>
    %199 = vector.shape_cast %198 : vector<1x8x8xf32> to vector<8x8xf32>
    %cst_144 = arith.constant dense<0.000000e+00> : vector<8x256xf32>
    %200 = tpu.matmul %199, %197, %cst_144 {dimension_numbers = #tpu.dot_dimension_numbers<[1], [0], [0], [1], [0, 0, 1, 1], [], []>} : vector<8x8xf32>, vector<8x256xf32>, vector<8x256xf32> -> vector<8x256xf32>
    %201 = arith.addf %192, %200 : vector<8x256xf32>
    %c0_145 = arith.constant 0 : index
    %c127_146 = arith.constant 127 : index
    %202 = vector.load %arg10[%c0_145, %c127_146] : memref<8x512xf32, #tpu.memory_space<vmem>>, vector<8x256xf32>
    %cst_147 = arith.constant 0.000000e+00 : f32
    %203 = vector.shape_cast %18 : vector<1x256xi1> to vector<1x256xi1>
    %204 = vector.broadcast %203 : vector<1x256xi1> to vector<8x256xi1>
    %205 = vector.broadcast %cst_147 : f32 to vector<8x256xf32>
    %206 = arith.select %204, %202, %205 : vector<8x256xi1>, vector<8x256xf32>
    %c3_148 = arith.constant 3 : index
    %c0_149 = arith.constant 0 : index
    %c0_150 = arith.constant 0 : index
    %207 = vector.load %arg6[%c3_148, %c0_149, %c0_150] : memref<9x8x8xf32, #tpu.memory_space<vmem>>, vector<1x8x8xf32>
    %208 = vector.shape_cast %207 : vector<1x8x8xf32> to vector<8x8xf32>
    %cst_151 = arith.constant dense<0.000000e+00> : vector<8x256xf32>
    %209 = tpu.matmul %208, %206, %cst_151 {dimension_numbers = #tpu.dot_dimension_numbers<[1], [0], [0], [1], [0, 0, 1, 1], [], []>} : vector<8x8xf32>, vector<8x256xf32>, vector<8x256xf32> -> vector<8x256xf32>
    %210 = arith.addf %201, %209 : vector<8x256xf32>
    %c0_152 = arith.constant 0 : index
    %c128_153 = arith.constant 128 : index
    %211 = vector.load %arg10[%c0_152, %c128_153] : memref<8x512xf32, #tpu.memory_space<vmem>>, vector<8x256xf32>
    %c4_154 = arith.constant 4 : index
    %c0_155 = arith.constant 0 : index
    %c0_156 = arith.constant 0 : index
    %212 = vector.load %arg6[%c4_154, %c0_155, %c0_156] : memref<9x8x8xf32, #tpu.memory_space<vmem>>, vector<1x8x8xf32>
    %213 = vector.shape_cast %212 : vector<1x8x8xf32> to vector<8x8xf32>
    %cst_157 = arith.constant dense<0.000000e+00> : vector<8x256xf32>
    %214 = tpu.matmul %213, %211, %cst_157 {dimension_numbers = #tpu.dot_dimension_numbers<[1], [0], [0], [1], [0, 0, 1, 1], [], []>} : vector<8x8xf32>, vector<8x256xf32>, vector<8x256xf32> -> vector<8x256xf32>
    %215 = arith.addf %210, %214 : vector<8x256xf32>
    %c0_158 = arith.constant 0 : index
    %c129_159 = arith.constant 129 : index
    %216 = vector.load %arg10[%c0_158, %c129_159] : memref<8x512xf32, #tpu.memory_space<vmem>>, vector<8x256xf32>
    %cst_160 = arith.constant 0.000000e+00 : f32
    %217 = vector.shape_cast %20 : vector<1x256xi1> to vector<1x256xi1>
    %218 = vector.broadcast %217 : vector<1x256xi1> to vector<8x256xi1>
    %219 = vector.broadcast %cst_160 : f32 to vector<8x256xf32>
    %220 = arith.select %218, %216, %219 : vector<8x256xi1>, vector<8x256xf32>
    %c5_161 = arith.constant 5 : index
    %c0_162 = arith.constant 0 : index
    %c0_163 = arith.constant 0 : index
    %221 = vector.load %arg6[%c5_161, %c0_162, %c0_163] : memref<9x8x8xf32, #tpu.memory_space<vmem>>, vector<1x8x8xf32>
    %222 = vector.shape_cast %221 : vector<1x8x8xf32> to vector<8x8xf32>
    %cst_164 = arith.constant dense<0.000000e+00> : vector<8x256xf32>
    %223 = tpu.matmul %222, %220, %cst_164 {dimension_numbers = #tpu.dot_dimension_numbers<[1], [0], [0], [1], [0, 0, 1, 1], [], []>} : vector<8x8xf32>, vector<8x256xf32>, vector<8x256xf32> -> vector<8x256xf32>
    %224 = arith.addf %215, %223 : vector<8x256xf32>
    %c0_165 = arith.constant 0 : index
    %c143_166 = arith.constant 143 : index
    %225 = vector.load %arg10[%c0_165, %c143_166] : memref<8x512xf32, #tpu.memory_space<vmem>>, vector<8x256xf32>
    %cst_167 = arith.constant 0.000000e+00 : f32
    %226 = vector.shape_cast %18 : vector<1x256xi1> to vector<1x256xi1>
    %227 = vector.broadcast %226 : vector<1x256xi1> to vector<8x256xi1>
    %228 = vector.broadcast %cst_167 : f32 to vector<8x256xf32>
    %229 = arith.select %227, %225, %228 : vector<8x256xi1>, vector<8x256xf32>
    %c6_168 = arith.constant 6 : index
    %c0_169 = arith.constant 0 : index
    %c0_170 = arith.constant 0 : index
    %230 = vector.load %arg6[%c6_168, %c0_169, %c0_170] : memref<9x8x8xf32, #tpu.memory_space<vmem>>, vector<1x8x8xf32>
    %231 = vector.shape_cast %230 : vector<1x8x8xf32> to vector<8x8xf32>
    %cst_171 = arith.constant dense<0.000000e+00> : vector<8x256xf32>
    %232 = tpu.matmul %231, %229, %cst_171 {dimension_numbers = #tpu.dot_dimension_numbers<[1], [0], [0], [1], [0, 0, 1, 1], [], []>} : vector<8x8xf32>, vector<8x256xf32>, vector<8x256xf32> -> vector<8x256xf32>
    %233 = arith.addf %224, %232 : vector<8x256xf32>
    %c0_172 = arith.constant 0 : index
    %c144_173 = arith.constant 144 : index
    %234 = vector.load %arg10[%c0_172, %c144_173] : memref<8x512xf32, #tpu.memory_space<vmem>>, vector<8x256xf32>
    %c7_174 = arith.constant 7 : index
    %c0_175 = arith.constant 0 : index
    %c0_176 = arith.constant 0 : index
    %235 = vector.load %arg6[%c7_174, %c0_175, %c0_176] : memref<9x8x8xf32, #tpu.memory_space<vmem>>, vector<1x8x8xf32>
    %236 = vector.shape_cast %235 : vector<1x8x8xf32> to vector<8x8xf32>
    %cst_177 = arith.constant dense<0.000000e+00> : vector<8x256xf32>
    %237 = tpu.matmul %236, %234, %cst_177 {dimension_numbers = #tpu.dot_dimension_numbers<[1], [0], [0], [1], [0, 0, 1, 1], [], []>} : vector<8x8xf32>, vector<8x256xf32>, vector<8x256xf32> -> vector<8x256xf32>
    %238 = arith.addf %233, %237 : vector<8x256xf32>
    %c0_178 = arith.constant 0 : index
    %c145_179 = arith.constant 145 : index
    %239 = vector.load %arg10[%c0_178, %c145_179] : memref<8x512xf32, #tpu.memory_space<vmem>>, vector<8x256xf32>
    %cst_180 = arith.constant 0.000000e+00 : f32
    %240 = vector.shape_cast %20 : vector<1x256xi1> to vector<1x256xi1>
    %241 = vector.broadcast %240 : vector<1x256xi1> to vector<8x256xi1>
    %242 = vector.broadcast %cst_180 : f32 to vector<8x256xf32>
    %243 = arith.select %241, %239, %242 : vector<8x256xi1>, vector<8x256xf32>
    %c8_181 = arith.constant 8 : index
    %c0_182 = arith.constant 0 : index
    %c0_183 = arith.constant 0 : index
    %244 = vector.load %arg6[%c8_181, %c0_182, %c0_183] : memref<9x8x8xf32, #tpu.memory_space<vmem>>, vector<1x8x8xf32>
    %245 = vector.shape_cast %244 : vector<1x8x8xf32> to vector<8x8xf32>
    %cst_184 = arith.constant dense<0.000000e+00> : vector<8x256xf32>
    %246 = tpu.matmul %245, %243, %cst_184 {dimension_numbers = #tpu.dot_dimension_numbers<[1], [0], [0], [1], [0, 0, 1, 1], [], []>} : vector<8x8xf32>, vector<8x256xf32>, vector<8x256xf32> -> vector<8x256xf32>
    %247 = arith.addf %238, %246 : vector<8x256xf32>
    %c0_185 = arith.constant 0 : index
    %c0_186 = arith.constant 0 : index
    %248 = vector.load %arg8[%c0_185, %c0_186] : memref<8x4xf32, #tpu.memory_space<vmem>>, vector<8x4xf32>
    %cst_187 = arith.constant dense<0.000000e+00> : vector<8x256xf32>
    %249 = tpu.matmul %248, %24, %cst_187 {dimension_numbers = #tpu.dot_dimension_numbers<[1], [0], [0], [1], [0, 0, 1, 1], [], []>} : vector<8x4xf32>, vector<4x256xf32>, vector<8x256xf32> -> vector<8x256xf32>
    %250 = arith.addf %247, %249 : vector<8x256xf32>
    %cst_188 = arith.constant 0.000000e+00 : f32
    %251 = vector.broadcast %cst_188 : f32 to vector<8x256xf32>
    %252 = arith.maximumf %250, %251 : vector<8x256xf32>
    %c0_189 = arith.constant 0 : index
    %c0_190 = arith.constant 0 : index
    %c0_191 = arith.constant 0 : index
    %253 = vector.load %arg9[%c0_189, %c0_190, %c0_191] : memref<1x8x256xf32, #tpu.memory_space<vmem>>, vector<1x8x256xf32>
    %254 = vector.shape_cast %253 : vector<1x8x256xf32> to vector<8x256xf32>
    %255 = vector.shape_cast %252 : vector<8x256xf32> to vector<1x8x256xf32>
    tpu.vector_store %arg9[%c0_189, %c0_190, %c0_191], %255 {strides = array<i32>} : memref<1x8x256xf32, #tpu.memory_space<vmem>>, vector<1x8x256xf32>,
    return
  }
  func.func @transform_0(%arg0: i32) -> (i32, i32, i32) {
    %c0_i32 = arith.constant 0 : i32
    %c0_i32_0 = arith.constant 0 : i32
    %c0_i32_1 = arith.constant 0 : i32
    return %arg0, %c0_i32, %c0_i32_0 : i32, i32, i32
  }
  func.func @transform_1(%arg0: i32) -> (i32, i32, i32) {
    %c0_i32 = arith.constant 0 : i32
    %c0_i32_0 = arith.constant 0 : i32
    %c0_i32_1 = arith.constant 0 : i32
    %c0_i32_2 = arith.constant 0 : i32
    return %c0_i32, %c0_i32_0, %c0_i32_1 : i32, i32, i32
  }
  func.func @transform_2(%arg0: i32) -> (i32, i32) {
    %c0_i32 = arith.constant 0 : i32
    %c0_i32_0 = arith.constant 0 : i32
    %c0_i32_1 = arith.constant 0 : i32
    return %c0_i32, %c0_i32_0 : i32, i32
  }
  func.func @transform_3(%arg0: i32) -> (i32, i32, i32) {
    %c0_i32 = arith.constant 0 : i32
    %c0_i32_0 = arith.constant 0 : i32
    %c0_i32_1 = arith.constant 0 : i32
    %c0_i32_2 = arith.constant 0 : i32
    return %c0_i32, %c0_i32_0, %c0_i32_1 : i32, i32, i32
  }
  func.func @transform_4(%arg0: i32) -> (i32, i32) {
    %c0_i32 = arith.constant 0 : i32
    %c0_i32_0 = arith.constant 0 : i32
    %c0_i32_1 = arith.constant 0 : i32
    return %c0_i32, %c0_i32_0 : i32, i32
  }
  func.func @transform_5(%arg0: i32) -> (i32, i32, i32) {
    %c0_i32 = arith.constant 0 : i32
    %c0_i32_0 = arith.constant 0 : i32
    %c0_i32_1 = arith.constant 0 : i32
    %c0_i32_2 = arith.constant 0 : i32
    return %c0_i32, %c0_i32_0, %c0_i32_1 : i32, i32, i32
  }
  func.func @transform_6(%arg0: i32) -> (i32, i32) {
    %c0_i32 = arith.constant 0 : i32
    %c0_i32_0 = arith.constant 0 : i32
    %c0_i32_1 = arith.constant 0 : i32
    return %c0_i32, %c0_i32_0 : i32, i32
  }
  func.func @transform_7(%arg0: i32) -> (i32, i32) {
    %c0_i32 = arith.constant 0 : i32
    %c0_i32_0 = arith.constant 0 : i32
    %c0_i32_1 = arith.constant 0 : i32
    return %c0_i32, %c0_i32_0 : i32, i32
  }
  func.func @transform_8(%arg0: i32) -> (i32, i32, i32) {
    %c0_i32 = arith.constant 0 : i32
    %c0_i32_0 = arith.constant 0 : i32
    %c0_i32_1 = arith.constant 0 : i32
    return %arg0, %c0_i32, %c0_i32_0 : i32, i32, i32
  }
}

</mosaic_0001>

<bundles_post_ra>
// kernel: tpu_custom_call.1
= control target key start
LH: loop header
LB: loop body
LE: loop exit
PB: predicated region body
PF: predicated region fallthrough
CT: control target
= control target key end

     0   :  { %13 = vsyncpa [#allocation4], 0  ;;  %s3003_s0 = inlined_call_operand.vmem [shape: f32[2,4,256], index: 0, kind: input, shape index: {}]   ;;  %s3004_s1 = inlined_call_operand.vmem [shape: f32[9,8,4], index: 1, kind: input, shape index: {}]   ;;  %s3005_s2 = inlined_call_operand.vmem [shape: f32[8,1], index: 2, kind: input, shape index: {}]   ;;  %s3006_s3 = inlined_call_operand.vmem [shape: f32[9,8,8], index: 3, kind: input, shape index: {}]   ;;  %s3007_s4 = inlined_call_operand.vmem [shape: f32[8,1], index: 4, kind: input, shape index: {}]   ;;  %s3008_s5 = inlined_call_operand.vmem [shape: f32[9,8,8], index: 5, kind: input, shape index: {}]   ;;  %s3009_s6 = inlined_call_operand.vmem [shape: f32[8,1], index: 6, kind: input, shape index: {}]   ;;  %s3010_s7 = inlined_call_operand.vmem [shape: f32[8,4], index: 7, kind: input, shape index: {}]   ;;  %s3011_s8 = inlined_call_operand.hbm [shape: f32[2,8,256], index: 8, kind: output, shape index: {}]  }
   0x1   :  { %15 = vsyncpa [#allocation4 + $0x1], 0  ;;  %s2476_s27 = smov 0   ;;  %s2478_s28 = smov 0  }
   0x2   :  { %s2480_s29 = smov 0   ;;  %s2482_s30 = smov 0  }
   0x3 LB: > { %s2497_s9 = sadd.s32 4294967295, %s2419_s30   ;;  %s2148_s10 = sadd.s32 4294967294, %s2419_s30   ;;  %s2419_s30 = sphi %s2482_s30, %s3025_s30   ;;  %s2415_s29 = sphi %s2480_s29, %s3024_s29   ;;  %s2411_s28 = sphi %s2478_s28, %s3023_s28   ;;  %s2407_s27 = sphi %s2476_s27, %s3022_s27  }
   0x4   : > { %s2501_s11 = sadd.s32 1, %s2419_s30   ;;  %s201_s12 = sadd.s32 1, %s2415_s29 }
   0x5   : > { %s198_s13 = ssub.s32 %s2419_s30, %s2501_s11  ;;  %p211_p0 = scmp.ne.s32.totalorder %s2415_s29, %s2411_s28 }
   0x6   : > { %p199_p1 = scmp.eq.s32.totalorder %s198_s13, 0  ;;  %p212_p2 = scmp.eq.s32.totalorder %s2497_s9, 1 }
   0x7   : > { %p217_p3 = scmp.ne.s32.totalorder %s2411_s28, %s2407_s27  ;;  %p218_p4 = scmp.eq.s32.totalorder %s2148_s10, 1 }
   0x8   : > { %s2512_s14 = scalar_select %p199_p1, %s2415_s29, %s201_s12  }
   0x9   : > { %p2514_p5 = por %p212_p2, %p211_p0  ;;  %p2518_p6 = por %p218_p4, %p217_p3 }
   0xa   : > { %p2151_p7 = scmp.ge.s32.totalorder %s2419_s30, 1  ;;  %p265_p8 = scmp.lt.s32.totalorder %s2419_s30, 3 }
   0xc   : > { %p266_p9 = pnand %p2151_p7, %p265_p8 }
   0xd   : > { %p299_p10 = scmp.lt.s32.totalorder (!%p266_p9), %s2497_s9, 1  ;;  %s2422_s22 = smov (!%p266_p9), 17  }
   0xe   : > { %269 = sbr.rel (%p266_p9) target bundleno = 937 (0x3a9), region = 52  ;;  %s2423_s23 = smov (!%p266_p9), 16  }
   0xf   : > { %s2424_s24 = smov (!%p266_p9), 15   ;;  %s2425_s25 = smov (!%p266_p9), 1  }
  0x10   : > { %s2426_s26 = smov (!%p266_p9), 127   ;;  %s2427_s10 = smov (!%p266_p9), 113  }
  0x11   : > { %s2428_s12 = smov (!%p266_p9), 112   ;;  %s2429_s13 = smov (!%p266_p9), 111  }
  0x12   : > { %s2285_s19 = sshll.u32 (!%p266_p9), %s2497_s9, 4 }
  0x13   : > { %v2421_v0 = vmov 0.0   ;;  %s300_s17 = scalar_select %p299_p10, %s2497_s9, 1  ;;  %vm439_vm0 = vcmask 130048   ;;  %vm382_vm1 = vcmask 1043456   ;;  %v304_v11 = vlaneseq  ;;  %v2159_v16 = vld [vmem:[%s3004_s1 + $0x8] sm:$0xff]  ;;  %v348_v24 = vld [vmem:[%s3005_s2] sm:$0xff] }
  0x14   : > { %335 = vst [vmem:[#allocation2 + $0x10] sm:$0xff] %v2421_v0  ;;  %vm378_vm2 = vcmask 31744   ;;  %v2430_v25 = vmov 0   ;;  %vm370_vm3 = vcmask 138240   ;;  %v377_v32 = vld [vmem:[%s3004_s1] sm:$0xff]  ;;  %vm501_vm6 = vcmask 121856  }
  0x15   : > { %336 = vst [vmem:[#allocation2] sm:$0xff] %v2421_v0  ;;  %s2284_s18 = sshll.u32 %s300_s17, 3  ;;  %v305_v18 = vand.u32 127, %v304_v11  ;;  %2335 = vset.pattern.permute.xlu0 %v2430_v25  ;;  %2356 = vset.pattern.permute.xlu2 %v2430_v25  ;;  %v2164_v44 = vld [vmem:[%s3004_s1 + $0x10] sm:$0xff]  ;;  %vm567_vm9 = vcmask 7168   ;;  %v2169_v49 = vld [vmem:[%s3004_s1 + $0x18] sm:$0xff] }
  0x16   : > { %337 = vst [vmem:[#allocation2 + $0x18] sm:$0xff] %v2421_v0  ;;  %s303_s21 = scalar_lea.vmem %s3003_s0, %s2284_s18  ;;  %v2174_v53 = vld [vmem:[%s3004_s1 + $0x20] sm:$0xff]  ;;  %vm690_vm10 = vcmask 1039360   ;;  %v2179_v57 = vld [vmem:[%s3004_s1 + $0x28] sm:$0xff]  ;;  %vm756_vm11 = vcmask 924672   ;;  %vm824_vm12 = vcmask 916480  }
  0x17   : > { %338 = vst [vmem:[#allocation2 + $0x8] sm:$0xff] %v2421_v0  ;;  %v339_v1 = vld [vmem:[%s303_s21] sm:$0xff]  ;;  %v306_v19 = vadd.s32 128, %v305_v18  ;;  %v311_v21 = vand.u32 15, %v305_v18  ;;  %vm882_vm13 = vcmask 908288   ;;  %vm971_vm14 = vcmask 64512  }
  0x18   : > { %341 = vst [vmem:[#allocation1] ss:$2 sm:$0xff] %v339_v1  ;;  %s296_s18 = sand.u32 1, %s2411_s28  }
  0x19   : > { %v318_v22 = vand.u32 15, %v306_v19  ;;  %vm2587_vm4 = vcmp.ne.s32.totalorder %v311_v21, 0  ;;  %vm2610_vm7 = vcmp.ne.s32.totalorder %v311_v21, 15  ;;  %s2152_s20 = sshll.u32 %s296_s18, 4  ;;  %s2073_s9 = scalar_lea.sflag [#allocation4], %s296_s18 }
  0x1b   : > { %v354_v2 = vld [vmem:[#allocation2 + $0x10] sm:$0xf]  ;;  %vm2591_vm5 = vcmp.ne.s32.totalorder %v318_v22, 0  ;;  %vm2614_vm8 = vcmp.ne.s32.totalorder %v318_v22, 15 }
  0x1c   : > { %364 = vrot.lane.b32.xlu0 %v354_v2, %s2422_s22  ;;  %433 = vrot.lane.b32.xlu1 %v354_v2, %s2423_s23 }
  0x1e   : > { %v680_v9 = vld [vmem:[#allocation2 + $0x8] sm:$0xf] }
  0x1f   : > { %v343_v3 = vld.sshfl [vmem:[#allocation1 + $0x8] sm:$0xff pattern:$0x75316420]  ;;  %v342_v4 = vld.sshfl [vmem:[#allocation1] sm:$0xff pattern:$0x75316420] }
  0x20   : > { %347 = vst [vmem:[#allocation2 + $0x18] sm:$0xf] %v343_v3 }
  0x21   : > { %346 = vst [vmem:[#allocation2] sm:$0xf] %v342_v4 }
  0x22   : > { %2016 = vst [vmem:[#allocation1] ss:$2 sm:$0xff] %v339_v1 }
  0x24   : > { %495 = vrot.lane.b32.xlu0 %v354_v2, %s2424_s24 }
  0x27   : > { %v2536_v5 = vld [vmem:[#allocation2 + $0x18] sm:$0xf] }
  0x28   : > { %368 = vrot.lane.b32.xlu1 %v2536_v5, %s2422_s22  ;;  %v2540_v6 = vld [vmem:[#allocation2] sm:$0xf]  ;;  %v679_v8 = vld [vmem:[#allocation2 + $0x18] sm:$0xf] }
  0x29   : > { %435 = vrot.lane.b32.xlu2 %v2540_v6, %s2423_s23  ;;  %v678_v7 = vld [vmem:[#allocation2] sm:$0xf] }
  0x2c   : > { %366 = vrot.lane.b32.xlu0 %v2540_v6, %s2422_s22 }
  0x30   : > { %497 = vrot.lane.b32.xlu1 %v2540_v6, %s2424_s24 }
  0x31   : > { %437 = vrot.lane.b32.xlu2 %v2536_v5, %s2423_s23 }
  0x34   : > { %561 = vrot.lane.b32.xlu0 %v354_v2, %s2425_s25  ;;  %v2184_v2 = vld [vmem:[%s3004_s1 + $0x30] sm:$0xff] }
  0x38   : > { %563 = vrot.lane.b32.xlu1 %v2540_v6, %s2425_s25 }
  0x39   : > { %499 = vrot.lane.b32.xlu2 %v2536_v5, %s2424_s24 }
  0x3c   : > { %684 = vrot.lane.b32.xlu0 %v678_v7, %s2426_s26 }
  0x40   : > { %686 = vrot.lane.b32.xlu1 %v679_v8, %s2426_s26 }
  0x41   : > { %565 = vrot.lane.b32.xlu2 %v2536_v5, %s2425_s25 }
  0x44   : > { %750 = vrot.lane.b32.xlu0 %v678_v7, %s2427_s10 }
  0x48   : > { %752 = vrot.lane.b32.xlu1 %v679_v8, %s2427_s10 }
  0x49   : > { %688 = vrot.lane.b32.xlu2 %v680_v9, %s2426_s26 }
  0x4c   : > { %818 = vrot.lane.b32.xlu0 %v678_v7, %s2428_s12 }
  0x50   : > { %820 = vrot.lane.b32.xlu1 %v679_v8, %s2428_s12 }
  0x51   : > { %754 = vrot.lane.b32.xlu2 %v680_v9, %s2427_s10 }
  0x54   : > { %876 = vrot.lane.b32.xlu0 %v678_v7, %s2429_s13 }
  0x58   : > { %878 = vrot.lane.b32.xlu1 %v679_v8, %s2429_s13  ;;  %v2189_v8 = vld [vmem:[%s3004_s1 + $0x38] sm:$0xff] }
  0x59   : > { %822 = vrot.lane.b32.xlu2 %v680_v9, %s2428_s12 }
  0x5c   : > { %351 = vperm.xlu0 %2335, %v348_v24  }
  0x60   : > { %958 = vrot.lane.b32.xlu1 %v2421_v0, %s2422_s22 }
  0x61   : > { %880 = vrot.lane.b32.xlu2 %v680_v9, %s2429_s13 }
  0x64   : > { %1308 = vrot.lane.b32.xlu0 %v2421_v0, %s2427_s10 }
  0x68   : > { %1133 = vrot.lane.b32.xlu1 %v2421_v0, %s2425_s25 }
  0x69   : > { %1074 = vrot.lane.b32.xlu2 %v2421_v0, %s2424_s24 }
  0x83   : > { %v436_v10 = vpop.permute.xlu2 %435 }
  0x8b   : > { %v438_v14 = vpop.permute.xlu2 %437 }
  0x8c   : > { %v441_v17 = vsel %vm439_vm0, %v436_v10, %v438_v14 }
  0x8d   : > { %2162 = vmatpush.msk.msra.mxu3 %vm382_vm1, %v441_v17 }
  0x8e   : > { %v365_v12 = vpop.permute.xlu0 %364  ;;  %v434_v13 = vpop.permute.xlu1 %433  ;;  %2163 = vmatmul.msk.f32.vlgmr.msra.gmra.mxu3 %vm378_vm2, %v2159_v16 }
  0x8f   : > { %v440_v15 = vsel %vm439_vm0, %v434_v13, %v436_v10 }
  0x90   : > { %2160 = vmatpush.msk.msra.mxu2 %vm382_vm1, %v440_v15 }
  0x91   : > { %2161 = vmatmul.msk.f32.vlgmr.msra.gmra.mxu2 %vm378_vm2, %v2159_v16  ;;  %v2194_v16 = vld [vmem:[%s3004_s1 + $0x40] sm:$0xff] }
  0x93   : > { %v500_v23 = vpop.permute.xlu2 %499 }
  0x96   : > { %v496_v20 = vpop.permute.xlu0 %495 }
  0x9a   : > { %v369_v26 = vpop.permute.xlu1 %368 }
  0x9b   : > { %v566_v35 = vpop.permute.xlu2 %565 }
  0x9e   : > { %v367_v29 = vpop.permute.xlu0 %366 }
  0x9f   : > { %v371_v30 = vsel %vm370_vm3, %v365_v12, %v367_v29  ;;  %v372_v31 = vsel %vm370_vm3, %v367_v29, %v369_v26 }
  0xa0   : > { %v375_v33 = vsel %vm2587_vm4, %v371_v30, 0.0  ;;  %v376_v34 = vsel %vm2591_vm5, %v372_v31, 0.0 }
  0xa1   : > { %2155 = vmatpush.msk.msra.mxu0 %vm382_vm1, %v375_v33  ;;  %2157 = vmatpush.msk.msra.mxu1 %vm382_vm1, %v376_v34 }
  0xa2   : > { %2158 = vmatmul.msk.f32.vlgmr.msra.gmra.mxu1 %vm378_vm2, %v377_v32  ;;  %2156 = vmatmul.msk.f32.vlgmr.msra.gmra.mxu0 %vm378_vm2, %v377_v32  ;;  %v498_v38 = vpop.permute.xlu1 %497 }
  0xa3   : > { %v502_v39 = vsel %vm501_vm6, %v496_v20, %v498_v38  ;;  %v503_v40 = vsel %vm501_vm6, %v498_v38, %v500_v23  ;;  %v689_v46 = vpop.permute.xlu2 %688 }
  0xa4   : > { %v506_v42 = vsel %vm2610_vm7, %v502_v39, 0.0  ;;  %v507_v43 = vsel %vm2614_vm8, %v503_v40, 0.0 }
  0xa5   : > { %2165 = vmatpush.msk.msrb.mxu0 %vm382_vm1, %v506_v42  ;;  %2167 = vmatpush.msk.msrb.mxu1 %vm382_vm1, %v507_v43 }
  0xa6   : > { %v562_v41 = vpop.permute.xlu0 %561 }
  0xa7   : > { %2177 = vmatpush.msk.msra.mxu1 %vm382_vm1, %v2536_v5  ;;  %2175 = vmatpush.msk.msra.mxu0 %vm382_vm1, %v2540_v6 }
  0xaa   : > { %2168 = vmatmul.msk.f32.vlgmr.msrb.gmra.mxu1 %vm378_vm2, %v2164_v44  ;;  %2166 = vmatmul.msk.f32.vlgmr.msrb.gmra.mxu0 %vm378_vm2, %v2164_v44  ;;  %v564_v45 = vpop.permute.xlu1 %563 }
  0xab   : > { %v569_v47 = vsel %vm567_vm9, %v564_v45, %v566_v35  ;;  %v568_v48 = vsel %vm567_vm9, %v562_v41, %v564_v45  ;;  %v755_v60 = vpop.permute.xlu2 %754 }
  0xac   : > { %v572_v51 = vsel %vm2587_vm4, %v568_v48, 0.0  ;;  %v573_v52 = vsel %vm2591_vm5, %v569_v47, 0.0 }
  0xad   : > { %2170 = vmatpush.msk.msrb.mxu2 %vm382_vm1, %v572_v51  ;;  %2172 = vmatpush.msk.msrb.mxu3 %vm382_vm1, %v573_v52 }
  0xae   : > { %v685_v50 = vpop.permute.xlu0 %684  ;;  %2173 = vmatmul.msk.f32.vlgmr.msrb.gmra.mxu3 %vm378_vm2, %v2169_v49  ;;  %2171 = vmatmul.msk.f32.vlgmr.msrb.gmra.mxu2 %vm378_vm2, %v2169_v49 }
  0xb2   : > { %2178 = vmatmul.msk.f32.vlgmr.msra.gmra.mxu1 %vm378_vm2, %v2174_v53  ;;  %2176 = vmatmul.msk.f32.vlgmr.msra.gmra.mxu0 %vm378_vm2, %v2174_v53  ;;  %v687_v54 = vpop.permute.xlu1 %686 }
  0xb3   : > { %v692_v55 = vsel %vm690_vm10, %v687_v54, %v689_v46  ;;  %v691_v56 = vsel %vm690_vm10, %v685_v50, %v687_v54  ;;  %v823_v5 = vpop.permute.xlu2 %822 }
  0xb4   : > { %v696_v58 = vsel %vm2614_vm8, %v692_v55, 0.0  ;;  %v695_v59 = vsel %vm2610_vm7, %v691_v56, 0.0 }
  0xb5   : > { %2180 = vmatpush.msk.msra.mxu2 %vm382_vm1, %v695_v59  ;;  %2182 = vmatpush.msk.msra.mxu3 %vm382_vm1, %v696_v58 }
  0xb6   : > { %v751_v61 = vpop.permute.xlu0 %750  ;;  %2183 = vmatmul.msk.f32.vlgmr.msra.gmra.mxu3 %vm378_vm2, %v2179_v57  ;;  %2181 = vmatmul.msk.f32.vlgmr.msra.gmra.mxu2 %vm378_vm2, %v2179_v57 }
  0xba   : > { %v753_v62 = vpop.permute.xlu1 %752 }
  0xbb   : > { %v758_v63 = vsel %vm756_vm11, %v753_v62, %v755_v60  ;;  %v757_v1 = vsel %vm756_vm11, %v751_v61, %v753_v62  ;;  %v881_v11 = vpop.permute.xlu2 %880 }
  0xbc   : > { %v762_v3 = vsel %vm2591_vm5, %v758_v63, 0.0  ;;  %v761_v4 = vsel %vm2587_vm4, %v757_v1, 0.0  ;;  %v946_v63 = vld [vmem:[%s3007_s4] sm:$0xff] }
  0xbd   : > { %2185 = vmatpush.msk.msrb.mxu0 %vm382_vm1, %v761_v4  ;;  %2187 = vmatpush.msk.msrb.mxu1 %vm382_vm1, %v762_v3 }
  0xbe   : > { %2188 = vmatmul.msk.f32.vlgmr.msrb.gmra.mxu1 %vm378_vm2, %v2184_v2  ;;  %v819_v6 = vpop.permute.xlu0 %818  ;;  %2186 = vmatmul.msk.f32.vlgmr.msrb.gmra.mxu0 %vm378_vm2, %v2184_v2 }
  0xc2   : > { %v821_v7 = vpop.permute.xlu1 %820 }
  0xc3   : > { %v826_v9 = vsel %vm824_vm12, %v821_v7, %v823_v5  ;;  %v825_v10 = vsel %vm824_vm12, %v819_v6, %v821_v7  ;;  %v1075_v2 = vpop.permute.xlu2 %1074  ;;  %v970_v5 = vld [vmem:[%s3006_s3] sm:$0xff] }
  0xc4   : > { %2190 = vmatpush.msk.msrb.mxu2 %vm382_vm1, %v825_v10  ;;  %2192 = vmatpush.msk.msrb.mxu3 %vm382_vm1, %v826_v9  ;;  %v2203_v10 = vld [vmem:[%s3006_s3 + $0x8] sm:$0xff] }
  0xc5   : > { %2191 = vmatmul.msk.f32.vlgmr.msrb.gmra.mxu2 %vm378_vm2, %v2189_v8  ;;  %2193 = vmatmul.msk.f32.vlgmr.msrb.gmra.mxu3 %vm378_vm2, %v2189_v8 }
  0xc6   : > { %v877_v12 = vpop.permute.xlu0 %876 }
  0xca   : > { %v879_v13 = vpop.permute.xlu1 %878 }
  0xcb   : > { %v884_v14 = vsel %vm882_vm13, %v879_v13, %v881_v11  ;;  %v883_v15 = vsel %vm882_vm13, %v877_v12, %v879_v13 }
  0xcc   : > { %v888_v17 = vsel %vm2614_vm8, %v884_v14, 0.0  ;;  %v887_v18 = vsel %vm2610_vm7, %v883_v15, 0.0 }
  0xcd   : > { %2195 = vmatpush.msk.msra.mxu0 %vm382_vm1, %v887_v18  ;;  %2197 = vmatpush.msk.msra.mxu1 %vm382_vm1, %v888_v17 }
  0xce   : > { %2196 = vmatmul.msk.f32.vlgmr.msra.gmra.mxu0 %vm378_vm2, %v2194_v16  ;;  %2198 = vmatmul.msk.f32.vlgmr.msra.gmra.mxu1 %vm378_vm2, %v2194_v16  ;;  %v352_v23 = vpop.permute.xlu0 %351  ;;  %v2211_v16 = vld [vmem:[%s3006_s3 + $0x18] sm:$0xff] }
  0xd2   : > { %v959_v3 = vpop.permute.xlu1 %958 }
  0xd6   : > { %v1309_v13 = vpop.permute.xlu0 %1308 }
  0xda   : > { %v1134_v12 = vpop.permute.xlu1 %1133 }
 0x111   : > { %v486_v22 = vpop.f32.mrf.mxu3 }
 0x114   : > { %v466_v21 = vpop.f32.mrf.mxu2 }
 0x11f   : > { %v406_v19 = vpop.f32.mrf.mxu0  ;;  %v426_v20 = vpop.f32.mrf.mxu1 }
 0x120   : > { %v429_v24 = vadd.f32 %v406_v19, %v352_v23  ;;  %v430_v29 = vadd.f32 %v426_v20, %v352_v23  ;;  %v2206_v19 = vld [vmem:[%s3006_s3 + $0x10] sm:$0xff] }
 0x122   : > { %v489_v30 = vadd.f32 %v466_v21, %v429_v24  ;;  %v490_v32 = vadd.f32 %v486_v22, %v430_v29  ;;  %v2216_v29 = vld [vmem:[%s3006_s3 + $0x20] sm:$0xff] }
 0x127   : > { %v536_v25 = vpop.f32.mrf.mxu0  ;;  %v556_v26 = vpop.f32.mrf.mxu1 }
 0x128   : > { %v559_v33 = vadd.f32 %v536_v25, %v489_v30  ;;  %v560_v38 = vadd.f32 %v556_v26, %v490_v32 }
 0x12f   : > { %v653_v35 = vpop.f32.mrf.mxu0  ;;  %v673_v39 = vpop.f32.mrf.mxu1 }
 0x131   : > { %v602_v31 = vpop.f32.mrf.mxu2  ;;  %v622_v34 = vpop.f32.mrf.mxu3 }
 0x132   : > { %v625_v40 = vadd.f32 %v602_v31, %v559_v33  ;;  %v626_v41 = vadd.f32 %v622_v34, %v560_v38 }
 0x134   : > { %v676_v42 = vadd.f32 %v653_v35, %v625_v40  ;;  %v677_v45 = vadd.f32 %v673_v39, %v626_v41  ;;  %v2224_v35 = vld [vmem:[%s3006_s3 + $0x30] sm:$0xff]  ;;  %v2219_v41 = vld [vmem:[%s3006_s3 + $0x28] sm:$0xff] }
 0x139   : > { %v725_v43 = vpop.f32.mrf.mxu2  ;;  %v745_v44 = vpop.f32.mrf.mxu3 }
 0x13a   : > { %v748_v46 = vadd.f32 %v725_v43, %v676_v42  ;;  %v749_v48 = vadd.f32 %v745_v44, %v677_v45 }
 0x13b   : > { %v791_v47 = vpop.f32.mrf.mxu0  ;;  %v811_v49 = vpop.f32.mrf.mxu1 }
 0x13c   : > { %v814_v50 = vadd.f32 %v791_v47, %v748_v46  ;;  %v815_v51 = vadd.f32 %v811_v49, %v749_v48  ;;  %v2232_v47 = vld [vmem:[%s3006_s3 + $0x40] sm:$0xff] }
 0x148   : > { %v851_v52 = vpop.f32.mrf.mxu2  ;;  %v871_v53 = vpop.f32.mrf.mxu3 }
 0x149   : > { %v874_v54 = vadd.f32 %v851_v52, %v814_v50  ;;  %v875_v55 = vadd.f32 %v871_v53, %v815_v51 }
 0x14b   : > { %v917_v56 = vpop.f32.mrf.mxu0  ;;  %v937_v57 = vpop.f32.mrf.mxu1 }
 0x14c   : > { %v940_v58 = vadd.f32 %v917_v56, %v874_v54  ;;  %v941_v59 = vadd.f32 %v937_v57, %v875_v55  ;;  %v2229_v54 = vld [vmem:[%s3006_s3 + $0x38] sm:$0xff] }
 0x14e   : > { %v942_v60 = vmax.f32 %v940_v58, 0.0  ;;  %v2701_v61 = vmax.f32 %v941_v59, 0.0 }
 0x150   : > { %962 = vrot.lane.b32.xlu1 %v2701_v61, %s2422_s22  ;;  %1076 = vrot.lane.b32.xlu0 %v942_v60, %s2424_s24  ;;  %v2336_v62 = vpack.i.bf16 %v942_v60, %v2421_v0  ;;  %v2341_v1 = vpack.i.bf16 %v2701_v61, %v942_v60 }
 0x151   : > { %960 = vrot.lane.b32.xlu2 %v942_v60, %s2422_s22 }
 0x158   : > { %1078 = vrot.lane.b32.xlu1 %v2701_v61, %s2424_s24  ;;  %1023 = vrot.lane.b32.xlu0 %v2701_v61, %s2423_s23 }
 0x159   : > { %2337 = vrot.lane.b32.xlu2 %v2336_v62, %s2423_s23 }
 0x160   : > { %1304 = vrot.lane.b32.xlu1 %v942_v60, %s2427_s10  ;;  %1137 = vrot.lane.b32.xlu0 %v2701_v61, %s2425_s25 }
 0x161   : > { %1135 = vrot.lane.b32.xlu2 %v942_v60, %s2425_s25 }
 0x168   : > { %1245 = vrot.lane.b32.xlu1 %v942_v60, %s2426_s26  ;;  %1249 = vrot.lane.b32.xlu0 %v2421_v0, %s2426_s26 }
 0x169   : > { %1306 = vrot.lane.b32.xlu2 %v2701_v61, %s2427_s10 }
 0x170   : > { %1420 = vrot.lane.b32.xlu1 %v942_v60, %s2429_s13  ;;  %1424 = vrot.lane.b32.xlu0 %v2421_v0, %s2429_s13 }
 0x171   : > { %1247 = vrot.lane.b32.xlu2 %v2701_v61, %s2426_s26 }
 0x178   : > { %2342 = vrot.lane.b32.xlu1 %v2341_v1, %s2428_s12  ;;  %949 = vperm.xlu0 %2335, %v946_v63  }
 0x179   : > { %1422 = vrot.lane.b32.xlu2 %v2701_v61, %s2429_s13 }
 0x180   : > { %1495 = vrot.lane.b32.xlu0 %v2421_v0, %s2422_s22 }
 0x181   : > { %1369 = vrot.lane.b32.xlu2 %v2421_v0, %s2428_s12 }
 0x188   : > { %1669 = vrot.lane.b32.xlu0 %v2421_v0, %s2425_s25 }
 0x190   : > { %1610 = vrot.lane.b32.xlu0 %v2421_v0, %s2424_s24 }
 0x1ab   : > { %v961_v4 = vpop.permute.xlu2 %960 }
 0x1ac   : > { %v964_v6 = vsel %vm370_vm3, %v959_v3, %v961_v4 }
 0x1ad   : > { %2199 = vmatpush.msk.msra.mxu2 %vm2587_vm4, %v964_v6 }
 0x1ae   : > { %2200 = vmatmul.msk.f32.vlgmr.msra.gmra.mxu2 %vm971_vm14, %v970_v5 }
 0x1b3   : > { %v2338_v7 = vpop.permute.xlu2 %2337 }
 0x1b4   : > { %v2340_v8 = vunpack.i.h.bf16 %v2338_v7  ;;  %v2339_v9 = vunpack.i.l.bf16 %v2338_v7 }
 0x1b6   : > { %v1025_v11 = vsel %vm439_vm0, %v2339_v9, %v2340_v8 }
 0x1b7   : > { %1047 = vmatpush.msrb.mxu0 %v1025_v11 }
 0x1b8   : > { %2204 = vmatmul.msk.f32.vlgmr.msrb.gmra.mxu0 %vm971_vm14, %v2203_v10 }
 0x1bb   : > { %v1136_v14 = vpop.permute.xlu2 %1135 }
 0x1bc   : > { %v1139_v15 = vsel %vm567_vm9, %v1134_v12, %v1136_v14 }
 0x1bd   : > { %2212 = vmatpush.msk.msra.mxu0 %vm2587_vm4, %v1139_v15 }
 0x1c0   : > { %2213 = vmatmul.msk.f32.vlgmr.msra.gmra.mxu0 %vm971_vm14, %v2211_v16 }
 0x1c2   : > { %v963_v17 = vpop.permute.xlu1 %962  ;;  %v1077_v18 = vpop.permute.xlu0 %1076 }
 0x1c3   : > { %v965_v20 = vsel %vm370_vm3, %v961_v4, %v963_v17  ;;  %v1080_v21 = vsel %vm501_vm6, %v1075_v2, %v1077_v18  ;;  %v1307_v24 = vpop.permute.xlu2 %1306 }
 0x1c4   : > { %2201 = vmatpush.msk.msra.mxu3 %vm2591_vm5, %v965_v20  ;;  %2207 = vmatpush.msk.msrb.mxu2 %vm2610_vm7, %v1080_v21  ;;  %v1311_v30 = vsel %vm756_vm11, %v1307_v24, %v1309_v13 }
 0x1c5   : > { %2202 = vmatmul.msk.f32.vlgmr.msra.gmra.mxu3 %vm971_vm14, %v970_v5  ;;  %2208 = vmatmul.msk.f32.vlgmr.msrb.gmra.mxu2 %vm971_vm14, %v2206_v19 }
 0x1c6   : > { %1212 = vmatpush.msra.mxu2 %v942_v60 }
 0x1ca   : > { %v1079_v22 = vpop.permute.xlu1 %1078  ;;  %v1024_v23 = vpop.permute.xlu0 %1023 }
 0x1cb   : > { %v1081_v25 = vsel %vm501_vm6, %v1077_v18, %v1079_v22  ;;  %v1026_v26 = vsel %vm439_vm0, %v2340_v8, %v1024_v23  ;;  %v1248_v38 = vpop.permute.xlu2 %1247 }
 0x1cc   : > { %1067 = vmatpush.msrb.mxu1 %v1026_v26  ;;  %2209 = vmatpush.msk.msrb.mxu3 %vm2614_vm8, %v1081_v25 }
 0x1cd   : > { %2205 = vmatmul.msk.f32.vlgmr.msrb.gmra.mxu1 %vm971_vm14, %v2203_v10  ;;  %2210 = vmatmul.msk.f32.vlgmr.msrb.gmra.mxu3 %vm971_vm14, %v2206_v19 }
 0x1ce   : > { %2217 = vmatmul.msk.f32.vlgmr.msra.gmra.mxu2 %vm971_vm14, %v2216_v29  ;;  %1232 = vmatpush.msra.mxu3 %v2701_v61 }
 0x1d0   : > { %2227 = vmatpush.msk.msrb.mxu3 %vm2591_vm5, %v1311_v30 }
 0x1d2   : > { %v1305_v31 = vpop.permute.xlu1 %1304  ;;  %v1138_v32 = vpop.permute.xlu0 %1137 }
 0x1d3   : > { %v1310_v33 = vsel %vm756_vm11, %v1305_v31, %v1307_v24  ;;  %v1140_v34 = vsel %vm567_vm9, %v1136_v14, %v1138_v32  ;;  %v1423_v44 = vpop.permute.xlu2 %1422 }
 0x1d4   : > { %2214 = vmatpush.msk.msra.mxu1 %vm2591_vm5, %v1140_v34  ;;  %2225 = vmatpush.msk.msrb.mxu2 %vm2587_vm4, %v1310_v33 }
 0x1d5   : > { %2215 = vmatmul.msk.f32.vlgmr.msra.gmra.mxu1 %vm971_vm14, %v2211_v16  ;;  %2218 = vmatmul.msk.f32.vlgmr.msra.gmra.mxu3 %vm971_vm14, %v2216_v29 }
 0x1d6   : > { %2226 = vmatmul.msk.f32.vlgmr.msrb.gmra.mxu2 %vm971_vm14, %v2224_v35 }
 0x1da   : > { %v1246_v39 = vpop.permute.xlu1 %1245  ;;  %v1250_v40 = vpop.permute.xlu0 %1249 }
 0x1db   : > { %v1251_v42 = vsel %vm690_vm10, %v1246_v39, %v1248_v38  ;;  %v1252_v43 = vsel %vm690_vm10, %v1248_v38, %v1250_v40  ;;  %v1370_v51 = vpop.permute.xlu2 %1369 }
 0x1dc   : > { %2220 = vmatpush.msk.msrb.mxu0 %vm2610_vm7, %v1251_v42  ;;  %2222 = vmatpush.msk.msrb.mxu1 %vm2614_vm8, %v1252_v43 }
 0x1dd   : > { %2221 = vmatmul.msk.f32.vlgmr.msrb.gmra.mxu0 %vm971_vm14, %v2219_v41  ;;  %2223 = vmatmul.msk.f32.vlgmr.msrb.gmra.mxu1 %vm971_vm14, %v2219_v41 }
 0x1de   : > { %2228 = vmatmul.msk.f32.vlgmr.msrb.gmra.mxu3 %vm971_vm14, %v2224_v35 }
 0x1e2   : > { %v1421_v45 = vpop.permute.xlu1 %1420  ;;  %v1425_v46 = vpop.permute.xlu0 %1424 }
 0x1e3   : > { %v1426_v48 = vsel %vm882_vm13, %v1421_v45, %v1423_v44  ;;  %v1427_v49 = vsel %vm882_vm13, %v1423_v44, %v1425_v46 }
 0x1e4   : > { %2233 = vmatpush.msk.msra.mxu2 %vm2610_vm7, %v1426_v48  ;;  %2235 = vmatpush.msk.msra.mxu3 %vm2614_vm8, %v1427_v49 }
 0x1e5   : > { %2234 = vmatmul.msk.f32.vlgmr.msra.gmra.mxu2 %vm971_vm14, %v2232_v47 }
 0x1e6   : > { %2236 = vmatmul.msk.f32.vlgmr.msra.gmra.mxu3 %vm971_vm14, %v2232_v47 }
 0x1ea   : > { %v2343_v50 = vpop.permute.xlu1 %2342  ;;  %v950_v63 = vpop.permute.xlu0 %949 }
 0x1eb   : > { %v2345_v52 = vunpack.i.h.bf16 %v2343_v50  ;;  %v2344_v53 = vunpack.i.l.bf16 %v2343_v50  ;;  %v2241_v50 = vld [vmem:[%s3008_s5 + $0x8] sm:$0xff] }
 0x1ed   : > { %v1372_v55 = vsel %vm824_vm12, %v2345_v52, %v1370_v51  ;;  %v1371_v56 = vsel %vm824_vm12, %v2344_v53, %v2345_v52  ;;  %v1507_v53 = vld [vmem:[%s3008_s5] sm:$0xff] }
 0x1ee   : > { %1393 = vmatpush.msra.mxu0 %v1371_v56  ;;  %1413 = vmatpush.msra.mxu1 %v1372_v55 }
 0x1ef   : > { %2230 = vmatmul.msk.f32.vlgmr.msra.gmra.mxu0 %vm971_vm14, %v2229_v54  ;;  %2231 = vmatmul.msk.f32.vlgmr.msra.gmra.mxu1 %vm971_vm14, %v2229_v54 }
 0x1f2   : > { %v1496_v39 = vpop.permute.xlu0 %1495 }
 0x1fa   : > { %v1670_v42 = vpop.permute.xlu0 %1669 }
 0x202   : > { %v1611_v44 = vpop.permute.xlu0 %1610 }
 0x231   : > { %v992_v58 = vpop.f32.mrf.mxu2 }
 0x232   : > { %v1015_v4 = vadd.f32 %v992_v58, %v950_v63 }
 0x235   : > { %v1049_v62 = vpop.f32.mrf.mxu0 }
 0x236   : > { %v1072_v7 = vadd.f32 %v1049_v62, %v1015_v4 }
 0x23d   : > { %v1167_v6 = vpop.f32.mrf.mxu0 }
 0x248   : > { %v1012_v57 = vpop.f32.mrf.mxu3  ;;  %v1108_v61 = vpop.f32.mrf.mxu2 }
 0x249   : > { %v1016_v1 = vadd.f32 %v1012_v57, %v950_v63  ;;  %v1131_v9 = vadd.f32 %v1108_v61, %v1072_v7 }
 0x24a   : > { %v1069_v59 = vpop.f32.mrf.mxu1 }
 0x24b   : > { %v1073_v8 = vadd.f32 %v1069_v59, %v1016_v1  ;;  %v1190_v11 = vadd.f32 %v1167_v6, %v1131_v9  ;;  %v2249_v59 = vld [vmem:[%s3008_s5 + $0x18] sm:$0xff] }
 0x250   : > { %v1128_v60 = vpop.f32.mrf.mxu3 }
 0x251   : > { %v1214_v5 = vpop.f32.mrf.mxu2  ;;  %v1132_v10 = vadd.f32 %v1128_v60, %v1073_v8 }
 0x252   : > { %v1187_v3 = vpop.f32.mrf.mxu1  ;;  %v1237_v17 = vadd.f32 %v1214_v5, %v1190_v11  ;;  %v1483_v5 = vld [vmem:[%s3009_s6] sm:$0xff] }
 0x253   : > { %v1191_v12 = vadd.f32 %v1187_v3, %v1132_v10 }
 0x258   : > { %v1234_v2 = vpop.f32.mrf.mxu3 }
 0x259   : > { %v1338_v13 = vpop.f32.mrf.mxu2  ;;  %v1238_v18 = vadd.f32 %v1234_v2, %v1191_v12  ;;  %v2244_v2 = vld [vmem:[%s3008_s5 + $0x10] sm:$0xff]  ;;  %v2254_v12 = vld [vmem:[%s3008_s5 + $0x20] sm:$0xff] }
 0x25a   : > { %v1279_v15 = vpop.f32.mrf.mxu0  ;;  %v1299_v16 = vpop.f32.mrf.mxu1 }
 0x25b   : > { %v1302_v19 = vadd.f32 %v1279_v15, %v1237_v17  ;;  %v1303_v20 = vadd.f32 %v1299_v16, %v1238_v18  ;;  %v2017_v17 = vld.sshfl [vmem:[#allocation1] sm:$0xff pattern:$0x75316420] }
 0x25d   : > { %v1361_v21 = vadd.f32 %v1338_v13, %v1302_v19  ;;  %v2257_v13 = vld [vmem:[%s3008_s5 + $0x28] sm:$0xff]  ;;  %v2262_v19 = vld [vmem:[%s3008_s5 + $0x30] sm:$0xff] }
 0x261   : > { %v1358_v14 = vpop.f32.mrf.mxu3 }
 0x262   : > { %v1362_v22 = vadd.f32 %v1358_v14, %v1303_v20  ;;  %v2267_v20 = vld [vmem:[%s3008_s5 + $0x38] sm:$0xff] }
 0x268   : > { %v1454_v23 = vpop.f32.mrf.mxu2 }
 0x269   : > { %v1474_v24 = vpop.f32.mrf.mxu3 }
 0x26c   : > { %v1395_v25 = vpop.f32.mrf.mxu0  ;;  %v1415_v26 = vpop.f32.mrf.mxu1 }
 0x26d   : > { %v1418_v29 = vadd.f32 %v1395_v25, %v1361_v21  ;;  %v1419_v30 = vadd.f32 %v1415_v26, %v1362_v22  ;;  %v2018_v22 = vld.sshfl [vmem:[#allocation1 + $0x8] sm:$0xff pattern:$0x75316420]  ;;  %v2015_v25 = vld [vmem:[%s3010_s7] sm:$0xff] }
 0x26f   : > { %v1477_v31 = vadd.f32 %v1454_v23, %v1418_v29  ;;  %v1478_v32 = vadd.f32 %v1474_v24, %v1419_v30  ;;  %v2270_v23 = vld [vmem:[%s3008_s5 + $0x40] sm:$0xff] }
 0x271   : > { %v2828_v33 = vmax.f32 %v1477_v31, 0.0  ;;  %v2830_v34 = vmax.f32 %v1478_v32, 0.0 }
 0x273   : > { %1481 = vst [vmem:[#allocation2] sm:$0xff] %v2828_v33  ;;  %1559 = vrot.lane.b32.xlu2 %v2830_v34, %s2423_s23  ;;  %1781 = vrot.lane.b32.xlu0 %v2828_v33, %s2426_s26  ;;  %v2346_v35 = vpack.i.bf16 %v2828_v33, %v2421_v0  ;;  %v2351_v38 = vpack.i.bf16 %v2830_v34, %v2828_v33 }
 0x274   : > { %1482 = vst [vmem:[#allocation2 + $0x18] sm:$0xff] %v2830_v34 }
 0x275   : > { %2347 = vrot.lane.b32.xlu1 %v2346_v35, %s2423_s23  ;;  %s2084_s23 = scalar_lea.hbm %s3011_s8, %s2285_s19  ;;  %s2377_s19 = scalar_lea.hbm %s3011_s8, 32 }
 0x27b   : > { %1499 = vrot.lane.b32.xlu2 %v2830_v34, %s2422_s22  ;;  %2352 = vrot.lane.b32.xlu0 %v2351_v38, %s2428_s12 }
 0x27d   : > { %1497 = vrot.lane.b32.xlu1 %v2828_v33, %s2422_s22 }
 0x283   : > { %1673 = vrot.lane.b32.xlu2 %v2830_v34, %s2425_s25  ;;  %1842 = vrot.lane.b32.xlu0 %v2830_v34, %s2427_s10 }
 0x285   : > { %1671 = vrot.lane.b32.xlu1 %v2828_v33, %s2425_s25 }
 0x28b   : > { %1614 = vrot.lane.b32.xlu2 %v2830_v34, %s2424_s24  ;;  %1958 = vrot.lane.b32.xlu0 %v2830_v34, %s2429_s13 }
 0x28d   : > { %1612 = vrot.lane.b32.xlu1 %v2828_v33, %s2424_s24  ;;  %s298_s24 = scalar_lea.vmem [#allocation3], %s2152_s20 }
 0x28e   : > { %s2086_s25 = sshll.u32 %s298_s24, 4  ;;  %s2087_s25 = int_to_ptr.vmem [resolvable:$true] %s2086_s25 }
 0x293   : > { %1785 = vrot.lane.b32.xlu2 %v2421_v0, %s2426_s26 }
 0x295   : > { %1783 = vrot.lane.b32.xlu1 %v2830_v34, %s2426_s26  ;;  %s2088_s26 = sshll.u32 %s2084_s23, 4  ;;  %s2089_s26 = int_to_ptr.hbm [resolvable:$true] %s2088_s26 }
 0x29b   : > { %1840 = vrot.lane.b32.xlu2 %v2828_v33, %s2427_s10 }
 0x29d   : > { %1905 = vrot.lane.b32.xlu1 %v2421_v0, %s2428_s12 }
 0x2a3   : > { %1956 = vrot.lane.b32.xlu2 %v2828_v33, %s2429_s13 }
 0x2a5   : > { %1844 = vrot.lane.b32.xlu1 %v2421_v0, %s2427_s10  ;;  %s2371_s10 = sshra.s32 %s2089_s26, 4  ;;  %s2372_s10 = int_to_ptr.hbm [resolvable:$true] %s2371_s10 }
 0x2a6   : > { %s2373_s12 = scalar_lea.hbm %s2372_s10, 16  ;;  %p2378_p0 = scmp.lt.s32.totalorder %s2372_s10, %s3011_s8 }
 0x2a7   : > { %p2374_p11 = scmp.ne.s32.totalorder %s2372_s10, %s2373_s12  ;;  %p2379_p1 = scmp.lt.s32.totalorder %s2377_s19, %s2373_s12 }
 0x2a9   : > { %p2375_p12 = pnand %p2374_p11, %p2514_p5  ;;  %p2380_p2 = por %p2379_p1, %p2378_p0 }
 0x2ab   : > { %1486 = vperm.xlu2 %2356, %v1483_v5   ;;  %p2376_p13 = pneg %p2375_p12 }
 0x2ad   : > { %1960 = vrot.lane.b32.xlu1 %v2421_v0, %s2429_s13  ;;  %p2381_p3 = pnand %p2380_p2, %p2376_p13 }
 0x2cd   : > { %v1560_v40 = vpop.permute.xlu2 %1559 }
 0x2d5   : > { %v1500_v41 = vpop.permute.xlu2 %1499 }
 0x2dd   : > { %v1674_v43 = vpop.permute.xlu2 %1673 }
 0x2e5   : > { %v1615_v46 = vpop.permute.xlu2 %1614  ;;  %v1782_v49 = vpop.permute.xlu0 %1781 }
 0x2e7   : > { %v2348_v45 = vpop.permute.xlu1 %2347 }
 0x2e8   : > { %v2350_v47 = vunpack.i.h.bf16 %v2348_v45  ;;  %v2349_v48 = vunpack.i.l.bf16 %v2348_v45 }
 0x2ea   : > { %v1561_v51 = vsel %vm439_vm0, %v2349_v48, %v2350_v47  ;;  %v1562_v52 = vsel %vm439_vm0, %v2350_v47, %v1560_v40 }
 0x2eb   : > { %1583 = vmatpush.msrb.mxu2 %v1561_v51  ;;  %1603 = vmatpush.msrb.mxu3 %v1562_v52 }
 0x2ec   : > { %2242 = vmatmul.msk.f32.vlgmr.msrb.gmra.mxu2 %vm971_vm14, %v2241_v50  ;;  %2243 = vmatmul.msk.f32.vlgmr.msrb.gmra.mxu3 %vm971_vm14, %v2241_v50 }
 0x2ed   : > { %v1786_v56 = vpop.permute.xlu2 %1785  ;;  %v2353_v57 = vpop.permute.xlu0 %2352 }
 0x2ee   : > { %v2355_v7 = vunpack.i.h.bf16 %v2353_v57  ;;  %v2354_v8 = vunpack.i.l.bf16 %v2353_v57 }
 0x2ef   : > { %v1498_v0 = vpop.permute.xlu1 %1497 }
 0x2f0   : > { %v1501_v54 = vsel %vm370_vm3, %v1496_v39, %v1498_v0  ;;  %v1502_v55 = vsel %vm370_vm3, %v1498_v0, %v1500_v41  ;;  %v1907_v16 = vsel %vm824_vm12, %v2354_v8, %v2355_v7 }
 0x2f1   : > { %2237 = vmatpush.msk.msrb.mxu0 %vm2587_vm4, %v1501_v54  ;;  %2239 = vmatpush.msk.msrb.mxu1 %vm2591_vm5, %v1502_v55 }
 0x2f2   : > { %2238 = vmatmul.msk.f32.vlgmr.msrb.gmra.mxu0 %vm971_vm14, %v1507_v53  ;;  %2240 = vmatmul.msk.f32.vlgmr.msrb.gmra.mxu1 %vm971_vm14, %v1507_v53 }
 0x2f5   : > { %v1841_v62 = vpop.permute.xlu2 %1840  ;;  %v1843_v63 = vpop.permute.xlu0 %1842 }
 0x2f6   : > { %v1846_v6 = vsel %vm756_vm11, %v1841_v62, %v1843_v63 }
 0x2f7   : > { %v1672_v58 = vpop.permute.xlu1 %1671 }
 0x2f8   : > { %v1675_v60 = vsel %vm567_vm9, %v1670_v42, %v1672_v58  ;;  %v1676_v61 = vsel %vm567_vm9, %v1672_v58, %v1674_v43 }
 0x2f9   : > { %2250 = vmatpush.msk.msra.mxu2 %vm2587_vm4, %v1675_v60  ;;  %2252 = vmatpush.msk.msra.mxu3 %vm2591_vm5, %v1676_v61 }
 0x2fa   : > { %2251 = vmatmul.msk.f32.vlgmr.msra.gmra.mxu2 %vm971_vm14, %v2249_v59  ;;  %2253 = vmatmul.msk.f32.vlgmr.msra.gmra.mxu3 %vm971_vm14, %v2249_v59 }
 0x2fd   : > { %v1957_v9 = vpop.permute.xlu2 %1956  ;;  %v1959_v10 = vpop.permute.xlu0 %1958 }
 0x2fe   : > { %v1962_v27 = vsel %vm882_vm13, %v1957_v9, %v1959_v10 }
 0x2ff   : > { %v1613_v1 = vpop.permute.xlu1 %1612 }
 0x300   : > { %v1616_v3 = vsel %vm501_vm6, %v1611_v44, %v1613_v1  ;;  %v1617_v4 = vsel %vm501_vm6, %v1613_v1, %v1615_v46 }
 0x301   : > { %2245 = vmatpush.msk.msra.mxu0 %vm2610_vm7, %v1616_v3  ;;  %2247 = vmatpush.msk.msra.mxu1 %vm2614_vm8, %v1617_v4 }
 0x302   : > { %2246 = vmatmul.msk.f32.vlgmr.msra.gmra.mxu0 %vm971_vm14, %v2244_v2  ;;  %2248 = vmatmul.msk.f32.vlgmr.msra.gmra.mxu1 %vm971_vm14, %v2244_v2 }
 0x303   : > { %1768 = vmatpush.msrb.mxu1 %v2830_v34  ;;  %1748 = vmatpush.msrb.mxu0 %v2828_v33 }
 0x305   : > { %2263 = vmatpush.msk.msra.mxu0 %vm2587_vm4, %v1846_v6  ;;  %v1487_v33 = vpop.permute.xlu2 %1486 }
 0x307   : > { %v1784_v11 = vpop.permute.xlu1 %1783 }
 0x308   : > { %v1787_v14 = vsel %vm690_vm10, %v1782_v49, %v1784_v11  ;;  %v1788_v15 = vsel %vm690_vm10, %v1784_v11, %v1786_v56 }
 0x309   : > { %2258 = vmatpush.msk.msrb.mxu2 %vm2610_vm7, %v1787_v14  ;;  %2260 = vmatpush.msk.msrb.mxu3 %vm2614_vm8, %v1788_v15 }
 0x30a   : > { %2255 = vmatmul.msk.f32.vlgmr.msrb.gmra.mxu0 %vm971_vm14, %v2254_v12  ;;  %2259 = vmatmul.msk.f32.vlgmr.msrb.gmra.mxu2 %vm971_vm14, %v2257_v13 }
 0x30b   : > { %1929 = vmatpush.msra.mxu2 %v1907_v16  ;;  %2271 = vmatpush.msk.msrb.mxu0 %vm2610_vm7, %v1962_v27 }
 0x30c   : > { %2261 = vmatmul.msk.f32.vlgmr.msrb.gmra.mxu3 %vm971_vm14, %v2257_v13  ;;  %2256 = vmatmul.msk.f32.vlgmr.msrb.gmra.mxu1 %vm971_vm14, %v2254_v12 }
 0x30d   : > { %2275 = vmatpush.msk.msrb.mxu2 %vm382_vm1, %v2017_v17 }
 0x30f   : > { %v1906_v18 = vpop.permute.xlu1 %1905 }
 0x310   : > { %v1908_v21 = vsel %vm824_vm12, %v2355_v7, %v1906_v18 }
 0x311   : > { %1949 = vmatpush.msra.mxu3 %v1908_v21 }
 0x312   : > { %2264 = vmatmul.msk.f32.vlgmr.msra.gmra.mxu0 %vm971_vm14, %v2262_v19  ;;  %2268 = vmatmul.msk.f32.vlgmr.msra.gmra.mxu2 %vm971_vm14, %v2267_v20 }
 0x313   : > { %2277 = vmatpush.msk.msrb.mxu3 %vm382_vm1, %v2018_v22 }
 0x314   : > { %2269 = vmatmul.msk.f32.vlgmr.msra.gmra.mxu3 %vm971_vm14, %v2267_v20 }
 0x317   : > { %v1845_v36 = vpop.permute.xlu1 %1844 }
 0x318   : > { %v1847_v24 = vsel %vm756_vm11, %v1843_v63, %v1845_v36 }
 0x319   : > { %2265 = vmatpush.msk.msra.mxu1 %vm2591_vm5, %v1847_v24 }
 0x31a   : > { %2266 = vmatmul.msk.f32.vlgmr.msra.gmra.mxu1 %vm971_vm14, %v2262_v19  ;;  %2272 = vmatmul.msk.f32.vlgmr.msrb.gmra.mxu0 %vm971_vm14, %v2270_v23 }
 0x31b   : > { %2276 = vmatmul.msk.f32.vlgmr.msrb.gmra.mxu2 %vm378_vm2, %v2015_v25 }
 0x31c   : > { %2278 = vmatmul.msk.f32.vlgmr.msrb.gmra.mxu3 %vm378_vm2, %v2015_v25 }
 0x31f   : > { %v1961_v26 = vpop.permute.xlu1 %1960 }
 0x320   : > { %v1963_v29 = vsel %vm882_vm13, %v1959_v10, %v1961_v26 }
 0x321   : > { %2273 = vmatpush.msk.msrb.mxu1 %vm2614_vm8, %v1963_v29 }
 0x322   : > { %2274 = vmatmul.msk.f32.vlgmr.msrb.gmra.mxu1 %vm971_vm14, %v2270_v23 }
 0x36f   : > { %v1528_v30 = vpop.f32.mrf.mxu0  ;;  %v1585_v31 = vpop.f32.mrf.mxu2 }
 0x370   : > { %v1548_v28 = vpop.f32.mrf.mxu1  ;;  %v1605_v32 = vpop.f32.mrf.mxu3  ;;  %v1551_v35 = vadd.f32 %v1528_v30, %v1487_v33 }
 0x371   : > { %v1552_v41 = vadd.f32 %v1548_v28, %v1487_v33 }
 0x372   : > { %v1608_v39 = vadd.f32 %v1585_v31, %v1551_v35 }
 0x373   : > { %v1609_v45 = vadd.f32 %v1605_v32, %v1552_v41 }
 0x37d   : > { %v1703_v38 = vpop.f32.mrf.mxu2  ;;  %v1723_v42 = vpop.f32.mrf.mxu3 }
 0x37f   : > { %v1644_v34 = vpop.f32.mrf.mxu0  ;;  %v1664_v40 = vpop.f32.mrf.mxu1 }
 0x380   : > { %v1667_v44 = vadd.f32 %v1644_v34, %v1608_v39  ;;  %v1668_v47 = vadd.f32 %v1664_v40, %v1609_v45 }
 0x382   : > { %v1726_v46 = vadd.f32 %v1703_v38, %v1667_v44  ;;  %v1727_v52 = vadd.f32 %v1723_v42, %v1668_v47 }
 0x387   : > { %v1750_v43 = vpop.f32.mrf.mxu0 }
 0x388   : > { %v1773_v51 = vadd.f32 %v1750_v43, %v1726_v46 }
 0x389   : > { %v1770_v48 = vpop.f32.mrf.mxu1 }
 0x38a   : > { %v1774_v54 = vadd.f32 %v1770_v48, %v1727_v52 }
 0x38d   : > { %v1815_v37 = vpop.f32.mrf.mxu2 }
 0x38e   : > { %v1838_v0 = vadd.f32 %v1815_v37, %v1773_v51 }
 0x38f   : > { %v1874_v49 = vpop.f32.mrf.mxu0  ;;  %v1835_v50 = vpop.f32.mrf.mxu3 }
 0x390   : > { %v1897_v55 = vadd.f32 %v1874_v49, %v1838_v0  ;;  %v1839_v57 = vadd.f32 %v1835_v50, %v1774_v54 }
 0x395   : > { %v1931_v53 = vpop.f32.mrf.mxu2 }
 0x396   : > { %v1954_v59 = vadd.f32 %v1931_v53, %v1897_v55 }
 0x397   : > { %v1894_v56 = vpop.f32.mrf.mxu1  ;;  %v1951_v58 = vpop.f32.mrf.mxu3 }
 0x398   : > { %v1898_v60 = vadd.f32 %v1894_v56, %v1839_v57  ;;  %v1990_v61 = vpop.f32.mrf.mxu0 }
 0x399   : > { %v2013_v62 = vadd.f32 %v1990_v61, %v1954_v59 }
 0x39a   : > { %v1955_v63 = vadd.f32 %v1951_v58, %v1898_v60 }
 0x39e   : > { %v2043_v1 = vpop.f32.mrf.mxu2 }
 0x39f   : > { %v2066_v2 = vadd.f32 %v2043_v1, %v2013_v62  ;;  %v2010_v3 = vpop.f32.mrf.mxu1  ;;  %v2063_v5 = vpop.f32.mrf.mxu3 }
 0x3a0   : > { %v2014_v4 = vadd.f32 %v2010_v3, %v1955_v63 }
 0x3a1   : > { %v2068_v6 = vmax.f32 %v2066_v2, 0.0 }
 0x3a2   : > { %v2067_v7 = vadd.f32 %v2063_v5, %v2014_v4 }
 0x3a3   : > { %2070 = vst [vmem:[%s298_s24] sm:$0xff] %v2068_v6 }
 0x3a4   : > { %v2069_v8 = vmax.f32 %v2067_v7, 0.0 }
 0x3a6   : > { %2071 = vst [vmem:[%s298_s24 + $0x8] sm:$0xff] %v2069_v8 }
 0x3a7   : > { %2384 = shalt.err (!%p2381_p3)
}
 0x3a8   : > { %2286 = dma.vmem_to_hbm [thread:$0]  (%p2514_p5), %s2087_s25, 256, %s2089_s26, %s2073_s9  }
 0x3a9 PF: > { %p2292_p4 = scmp.ge.s32.totalorder %s2419_s30, 2  ;;  %s2100_s18 = sand.u32 1, %s2407_s27  }
 0x3aa   : > { %s2101_s22 = scalar_lea.sflag [#allocation4], %s2100_s18 }
 0x3ab   : > { %p2289_p7 = pnand %p2292_p4, %p2518_p6 }
 0x3ad   : > { %p2290_p8 = pneg %p2289_p7 }
 0x3af   : > { %2402 = dma.done.wait (%p2290_p8), %s2101_s22, 256  }
 0x3b0   : > { %2404 = vsyncadd (%p2290_p8), %s2101_s22, 4294967040  ;;  %p18_p9 = scmp.ge.s32.totalorder %s2501_s11, 4   ;;  %s3022_s27 = smov %s2411_s28 }
 0x3b1   : > { %s3023_s28 = smov %s2415_s29  ;;  %s3024_s29 = smov %s2512_s14 }
 0x3b2   : > { %s3025_s30 = smov %s2501_s11  ;;  %20 = sbr.rel (!%p18_p9) target bundleno = 3 (0x3), region = 111 }
 0x3b7   :  { %2107 = vsyncpa [#allocation4], 1 }
 0x3b8   :  { %2109 = vsyncpa [#allocation4 + $0x1], 1 }

</bundles_post_ra>
